<compile_context>
chip_gen: v6e
topology: v6e:2x2x1
jax: 0.10.0
libtpu: 0.0.40
codegen_flags: <defaults>
</compile_context>

<pallas_src>
import functools

import numpy as np
import jax
import jax.numpy as jnp
from jax.experimental import pallas as pl
from jax.experimental.pallas import tpu as pltpu


# ----------------------------- Pallas kernel --------------------------------
def memory_kernel(x_ref, s_ref, win_ref, wsr_ref, wout_ref, alr_ref, bias_ref,
                  ns_ref, out_ref, *, neurons):
    # x_ref:    [BT, U*D]   bf16  batch tile of inputs (flattened over units)
    # s_ref:    [BT, U*N]   f32   batch tile of reservoir states
    # win_ref:  [U*D, U*N]  bf16  block-diagonal input weights
    # wsr_ref:  [U*N, U*N]  bf16  block-diagonal recurrent weights, sr folded in
    # wout_ref: [U*N, U*O]  bf16  block-diagonal readout weights
    # alr_ref:  [U*D, U*N]  bf16  block-diag adaptive-lr (1/temperature folded
    #                             in), each unit's vector replicated over its
    #                             N columns
    # bias_ref: [1, U*N]    f32
    # ns_ref:   [BT, U*N]   f32   new state (output)
    # out_ref:  [BT, U*O]   f32   readout  (output)
    x = x_ref[...]                                   # [BT, U*D] bf16
    s = s_ref[...]                                   # [BT, U*N] f32

    # --- adaptive learning rate: softmax over units -------------------------
    # logits[b, u*N + n] == <x[b,u,:], adaptive_lr[u,:]>/temperature,
    # replicated across the N lanes of unit u.
    logits = jnp.dot(x, alr_ref[...], preferred_element_type=jnp.float32)
    m = jnp.max(logits, axis=-1, keepdims=True)      # max over units (lanes)
    e = jnp.exp(logits - m)                          # [BT, U*N]
    denom = jnp.sum(e, axis=-1, keepdims=True)       # = N * sum_u exp(l_u)
    # softmax over units; valid because every unit occupies exactly N lanes.
    lr = e * (float(neurons) * pl.reciprocal(denom, approx=False))

    # --- reservoir update: bf16 MXU matmuls, f32 accumulation ---------------
    feed = jnp.dot(x, win_ref[...], preferred_element_type=jnp.float32)
    echo = jnp.dot(s.astype(jnp.bfloat16), wsr_ref[...],
                   preferred_element_type=jnp.float32) + bias_ref[...]

    ns = s + lr * (jnp.tanh(feed + echo) - s)        # f32 elementwise
    ns_ref[...] = ns
    out_ref[...] = jnp.dot(ns.astype(jnp.bfloat16), wout_ref[...],
                           preferred_element_type=jnp.float32)


# --------------------------- one-time weight packing -------------------------
def pack_params(W, Win, bias, Wout, adaptive_lr, sr, temperature):
    """Pack per-unit weights into block-diagonal, lane-dense matrices.

    Call ONCE and reuse across timesteps/forward calls (weights/buffers do not
    change per step); only the kernel runs in the per-step path.
    """
    U, N, _ = W.shape
    D = Win.shape[1]
    O = Wout.shape[-1]
    UD, UN, UO = U * D, U * N, U * O
    eye = jnp.eye(U, dtype=jnp.float32)

    # fold the spectral-radius scale into the recurrent weights (W * sr).
    wsr = W.astype(jnp.float32) * sr.reshape(U, 1, 1).astype(jnp.float32)

    win_bd = jnp.einsum('udn,uv->udvn', Win.astype(jnp.float32),
                        eye).reshape(UD, UN).astype(jnp.bfloat16)
    wsr_bd = jnp.einsum('umn,uv->umvn', wsr,
                        eye).reshape(UN, UN).astype(jnp.bfloat16)
    wout_bd = jnp.einsum('uno,uv->unvo', Wout.astype(jnp.float32),
                         eye).reshape(UN, UO).astype(jnp.bfloat16)

    # fold 1/temperature into the adaptive-lr vectors; replicate over N lanes.
    alr = (adaptive_lr.reshape(U, D).astype(jnp.float32)
           / temperature.reshape(()).astype(jnp.float32))
    alr_rep = jnp.broadcast_to(alr[:, :, None], (U, D, N))
    alr_bd = jnp.einsum('udn,uv->udvn', alr_rep,
                        eye).reshape(UD, UN).astype(jnp.bfloat16)

    bias_flat = bias.reshape(1, UN).astype(jnp.float32)

    dims = (U, D, N, O)
    return (win_bd, wsr_bd, wout_bd, alr_bd, bias_flat, dims)


# --------------------------------- wrapper -----------------------------------
def memory_forward(X, state, packed, *, batch_tile=256):
    """Pallas-backed forward pass.

    X:      [B, U, D]
    state:  [B, U, N]
    packed: output of pack_params()
    Returns (new_state [B,U,N], output [B,U,O]).
    """
    win_bd, wsr_bd, wout_bd, alr_bd, bias_flat, (U, D, N, O) = packed
    B = X.shape[0]
    UD, UN, UO = U * D, U * N, U * O

    # ---- batch tiling: prefer a sublane-aligned tile that divides B so no
    # padding copy is needed; fall back to padding only for awkward B. -------
    BT = min(batch_tile, B)
    Bp = B
    if BT < B:
        best = 0
        for d in range(8, min(batch_tile, B) + 1, 8):
            if B % d == 0:
                best = d
        if best:
            BT = best
        else:
            BT = ((BT + 7) // 8) * 8
            Bp = -(-B // BT) * BT

    x2 = X.reshape(B, UD).astype(jnp.bfloat16)     # bf16 at the MXU boundary
    s2 = state.reshape(B, UN).astype(jnp.float32)
    if Bp != B:  # rare fallback; avoid by choosing B divisible by the tile
        x2 = jnp.pad(x2, ((0, Bp - B), (0, 0)))
        s2 = jnp.pad(s2, ((0, Bp - B), (0, 0)))

    kernel = functools.partial(memory_kernel, neurons=N)

    ns_flat, out_flat = pl.pallas_call(
        kernel,
        out_shape=(jax.ShapeDtypeStruct((Bp, UN), jnp.float32),
                   jax.ShapeDtypeStruct((Bp, UO), jnp.float32)),
        grid=(Bp // BT,),
        in_specs=[
            pl.BlockSpec((BT, UD), lambda i: (i, 0)),   # x2
            pl.BlockSpec((BT, UN), lambda i: (i, 0)),   # s2
            pl.BlockSpec((UD, UN), lambda i: (0, 0)),   # win_bd   (invariant)
            pl.BlockSpec((UN, UN), lambda i: (0, 0)),   # wsr_bd   (invariant)
            pl.BlockSpec((UN, UO), lambda i: (0, 0)),   # wout_bd  (invariant)
            pl.BlockSpec((UD, UN), lambda i: (0, 0)),   # alr_bd   (invariant)
            pl.BlockSpec((1, UN), lambda i: (0, 0)),    # bias_flat(invariant)
        ],
        out_specs=(pl.BlockSpec((BT, UN), lambda i: (i, 0)),
                   pl.BlockSpec((BT, UO), lambda i: (i, 0))),
        compiler_params=pltpu.CompilerParams(
            dimension_semantics=("parallel",),
            vmem_limit_bytes=32 * 1024 * 1024),
    )(x2, s2, win_bd, wsr_bd, wout_bd, alr_bd, bias_flat)

    new_state = ns_flat[:B].reshape(B, U, N)
    output = out_flat[:B].reshape(B, U, O)
    return new_state, output


# ------------------------ deterministic parameter init ----------------------
def init_params(units, neurons, input_dim, output_dim,
                res_connectivity=0.2, input_connectivity=0.2, bias_prob=0.5,
                seed=0):
    rng = np.random.default_rng(seed)

    def fixed_bernoulli(shape, connectivity):
        H, R, C = shape
        k = max(1, int(connectivity * R))
        m = np.zeros(shape, dtype=np.float32)
        for h in range(H):
            for c in range(C):
                idx = rng.permutation(R)[:k]
                m[h, idx, c] = 1.0
        return m

    W = (rng.normal(size=(units, neurons, neurons)).astype(np.float32)
         * fixed_bernoulli((units, neurons, neurons), res_connectivity))
    # spectral radius (host-side, init-time only -- mirrors torch buffer setup)
    eig = np.linalg.eigvals(W.astype(np.float64))
    initial_sr = np.max(np.abs(eig), axis=-1).reshape(units, 1, 1).astype(np.float32)
    W = W / initial_sr

    Win = fixed_bernoulli((units, input_dim, neurons), input_connectivity)
    bias = (rng.random((units, 1, neurons)) < bias_prob).astype(np.float32)
    Wout = rng.normal(size=(units, neurons, output_dim)).astype(np.float32)
    adaptive_lr = rng.random((units, input_dim, 1)).astype(np.float32)
    sr = rng.random((units, 1, 1)).astype(np.float32)
    temperature = np.ones((1,), dtype=np.float32)
    return W, Win, bias, Wout, adaptive_lr, sr, temperature


# ------------------------------ numpy reference ------------------------------
def reference_forward(X, state, W, Win, bias, Wout, adaptive_lr, sr, temperature):
    B, U, D = X.shape
    N = state.shape[-1]
    Xr = X.reshape(B, U, 1, D)
    Sr = state.reshape(B, U, 1, N)
    logits = np.einsum('buid,udk->buik', Xr, adaptive_lr) / temperature  # [B,U,1,1]
    m = logits.max(axis=1, keepdims=True)
    e = np.exp(logits - m)
    lr = e / e.sum(axis=1, keepdims=True)
    feed = np.einsum('buid,udn->buin', Xr, Win)
    echo = np.einsum('buin,unm->buim', Sr, W * sr) + bias
    new_state = (1.0 - lr) * Sr + lr * np.tanh(feed + echo)
    output = np.einsum('buin,unp->buip', new_state, Wout)
    return new_state[:, :, 0, :], output[:, :, 0, :]


# ----------------------------------- main ------------------------------------
if __name__ == "__main__":
    # units/neurons/dims stay small (U*N = U*O = 128 lanes); batch is sized so
    # the kernel runs 2 parallel tiles of 256 rows (fills the MXU, keeps both
    # v7x TensorCores busy) instead of tiny per-row steps.
    B, U, N, D, O = 512, 4, 32, 8, 32

    params = init_params(U, N, D, O, seed=0)

    key = jax.random.PRNGKey(0)
    kx, ks = jax.random.split(key)
    X = jax.random.normal(kx, (B, U, D), dtype=jnp.float32)
    state = jax.random.normal(ks, (B, U, N), dtype=jnp.float32)

    jparams = tuple(jnp.asarray(p) for p in params)
    packed = pack_params(*jparams)              # one-time packing, reused per step

    new_state, output = memory_forward(X, state, packed, batch_tile=256)
    new_state = jax.block_until_ready(new_state)
    output = jax.block_until_ready(output)

    # numerical check against a pure-numpy (f32) reference; tolerance accounts
    # for the bf16 MXU operands (f32 accumulation).
    ref_state, ref_out = reference_forward(np.asarray(X), np.asarray(state), *params)
    np.testing.assert_allclose(np.asarray(new_state), ref_state, rtol=5e-2, atol=5e-2)
    np.testing.assert_allclose(np.asarray(output), ref_out, rtol=5e-2, atol=5e-2)

    print("KERNEL_OK")
</pallas_src>

<mosaic_0001>
module attributes {stable_mosaic.version = 11 : i64} {
  func.func @memory_kernel(%arg0: i32, %arg1: memref<256x32xbf16, #tpu.memory_space<vmem>>, %arg2: memref<256x128xf32, #tpu.memory_space<vmem>>, %arg3: memref<32x128xbf16, #tpu.memory_space<vmem>>, %arg4: memref<128x128xbf16, #tpu.memory_space<vmem>>, %arg5: memref<128x128xbf16, #tpu.memory_space<vmem>>, %arg6: memref<32x128xbf16, #tpu.memory_space<vmem>>, %arg7: memref<1x128xf32, #tpu.memory_space<vmem>>, %arg8: memref<256x128xf32, #tpu.memory_space<vmem>>, %arg9: memref<256x128xf32, #tpu.memory_space<vmem>>) attributes {dimension_semantics = [#tpu.dimension_semantics<parallel>], iteration_bounds = array<i64: 2>, scalar_prefetch = 0 : i64, scratch_operands = 0 : i64, tpu.core_type = #tpu.core_type<tc>, window_params = [{transform_indices = @transform_0, window_bounds = array<i64: 256, 32>}, {transform_indices = @transform_1, window_bounds = array<i64: 256, 128>}, {pipeline_mode = #tpu.pipeline_mode<synchronous>, transform_indices = @transform_2, window_bounds = array<i64: 32, 128>}, {pipeline_mode = #tpu.pipeline_mode<synchronous>, transform_indices = @transform_3, window_bounds = array<i64: 128, 128>}, {pipeline_mode = #tpu.pipeline_mode<synchronous>, transform_indices = @transform_4, window_bounds = array<i64: 128, 128>}, {pipeline_mode = #tpu.pipeline_mode<synchronous>, transform_indices = @transform_5, window_bounds = array<i64: 32, 128>}, {pipeline_mode = #tpu.pipeline_mode<synchronous>, transform_indices = @transform_6, window_bounds = array<i64: 1, 128>}, {transform_indices = @transform_7, window_bounds = array<i64: 256, 128>}, {transform_indices = @transform_8, window_bounds = array<i64: 256, 128>}]} {
    %c0 = arith.constant 0 : index
    %c0_0 = arith.constant 0 : index
    %0 = vector.load %arg1[%c0, %c0_0] : memref<256x32xbf16, #tpu.memory_space<vmem>>, vector<256x32xbf16>
    %c0_1 = arith.constant 0 : index
    %c0_2 = arith.constant 0 : index
    %1 = vector.load %arg2[%c0_1, %c0_2] : memref<256x128xf32, #tpu.memory_space<vmem>>, vector<256x128xf32>
    %c0_3 = arith.constant 0 : index
    %c0_4 = arith.constant 0 : index
    %2 = vector.load %arg6[%c0_3, %c0_4] : memref<32x128xbf16, #tpu.memory_space<vmem>>, vector<32x128xbf16>
    %cst = arith.constant dense<0.000000e+00> : vector<256x128xf32>
    %3 = tpu.matmul %0, %2, %cst {dimension_numbers = #tpu.dot_dimension_numbers<[1], [0], [0], [1], [0, 0, 1, 1], [], []>} : vector<256x32xbf16>, vector<32x128xbf16>, vector<256x128xf32> -> vector<256x128xf32>
    %cst_5 = arith.constant dense<0xFF800000> : vector<256xf32>
    %4 = vector.multi_reduction <maximumf>, %3, %cst_5 [1] : vector<256x128xf32> to vector<256xf32>
    %5 = vector.shape_cast %4 : vector<256xf32> to vector<256x1xf32>
    %6 = vector.broadcast %5 : vector<256x1xf32> to vector<256x128xf32>
    %7 = arith.subf %3, %6 : vector<256x128xf32>
    %8 = math.exp %7 : vector<256x128xf32>
    %cst_6 = arith.constant dense<0.000000e+00> : vector<256xf32>
    %9 = vector.multi_reduction <add>, %8, %cst_6 [1] : vector<256x128xf32> to vector<256xf32>
    %10 = vector.shape_cast %9 : vector<256xf32> to vector<256x1xf32>
    %11 = tpu.reciprocal %10 : vector<256x1xf32> -> vector<256x1xf32>
    %cst_7 = arith.constant 3.200000e+01 : f32
    %12 = vector.broadcast %cst_7 : f32 to vector<256x1xf32>
    %13 = arith.mulf %12, %11 : vector<256x1xf32>
    %14 = vector.broadcast %13 : vector<256x1xf32> to vector<256x128xf32>
    %15 = arith.mulf %8, %14 : vector<256x128xf32>
    %c0_8 = arith.constant 0 : index
    %c0_9 = arith.constant 0 : index
    %16 = vector.load %arg3[%c0_8, %c0_9] : memref<32x128xbf16, #tpu.memory_space<vmem>>, vector<32x128xbf16>
    %cst_10 = arith.constant dense<0.000000e+00> : vector<256x128xf32>
    %17 = tpu.matmul %0, %16, %cst_10 {dimension_numbers = #tpu.dot_dimension_numbers<[1], [0], [0], [1], [0, 0, 1, 1], [], []>} : vector<256x32xbf16>, vector<32x128xbf16>, vector<256x128xf32> -> vector<256x128xf32>
    %18 = arith.truncf %1 : vector<256x128xf32> to vector<256x128xbf16>
    %c0_11 = arith.constant 0 : index
    %c0_12 = arith.constant 0 : index
    %19 = vector.load %arg4[%c0_11, %c0_12] : memref<128x128xbf16, #tpu.memory_space<vmem>>, vector<128x128xbf16>
    %cst_13 = arith.constant dense<0.000000e+00> : vector<256x128xf32>
    %20 = tpu.matmul %18, %19, %cst_13 {dimension_numbers = #tpu.dot_dimension_numbers<[1], [0], [0], [1], [0, 0, 1, 1], [], []>} : vector<256x128xbf16>, vector<128x128xbf16>, vector<256x128xf32> -> vector<256x128xf32>
    %c0_14 = arith.constant 0 : index
    %c0_15 = arith.constant 0 : index
    %21 = vector.load %arg7[%c0_14, %c0_15] : memref<1x128xf32, #tpu.memory_space<vmem>>, vector<1x128xf32>
    %22 = vector.broadcast %21 : vector<1x128xf32> to vector<256x128xf32>
    %23 = arith.addf %20, %22 : vector<256x128xf32>
    %24 = arith.addf %17, %23 : vector<256x128xf32>
    %25 = math.tanh %24 : vector<256x128xf32>
    %26 = arith.subf %25, %1 : vector<256x128xf32>
    %27 = arith.mulf %15, %26 : vector<256x128xf32>
    %28 = arith.addf %1, %27 : vector<256x128xf32>
    %c0_16 = arith.constant 0 : index
    %c0_17 = arith.constant 0 : index
    %29 = vector.load %arg8[%c0_16, %c0_17] : memref<256x128xf32, #tpu.memory_space<vmem>>, vector<256x128xf32>
    tpu.vector_store %arg8[%c0_16, %c0_17], %28 {strides = array<i32>} : memref<256x128xf32, #tpu.memory_space<vmem>>, vector<256x128xf32>,
    %30 = arith.truncf %28 : vector<256x128xf32> to vector<256x128xbf16>
    %c0_18 = arith.constant 0 : index
    %c0_19 = arith.constant 0 : index
    %31 = vector.load %arg5[%c0_18, %c0_19] : memref<128x128xbf16, #tpu.memory_space<vmem>>, vector<128x128xbf16>
    %cst_20 = arith.constant dense<0.000000e+00> : vector<256x128xf32>
    %32 = tpu.matmul %30, %31, %cst_20 {dimension_numbers = #tpu.dot_dimension_numbers<[1], [0], [0], [1], [0, 0, 1, 1], [], []>} : vector<256x128xbf16>, vector<128x128xbf16>, vector<256x128xf32> -> vector<256x128xf32>
    %c0_21 = arith.constant 0 : index
    %c0_22 = arith.constant 0 : index
    %33 = vector.load %arg9[%c0_21, %c0_22] : memref<256x128xf32, #tpu.memory_space<vmem>>, vector<256x128xf32>
    tpu.vector_store %arg9[%c0_21, %c0_22], %32 {strides = array<i32>} : memref<256x128xf32, #tpu.memory_space<vmem>>, vector<256x128xf32>,
    return
  }
  func.func @transform_0(%arg0: i32) -> (i32, i32) {
    %c0_i32 = arith.constant 0 : i32
    %c0_i32_0 = arith.constant 0 : i32
    return %arg0, %c0_i32 : i32, i32
  }
  func.func @transform_1(%arg0: i32) -> (i32, i32) {
    %c0_i32 = arith.constant 0 : i32
    %c0_i32_0 = arith.constant 0 : i32
    return %arg0, %c0_i32 : i32, i32
  }
  func.func @transform_2(%arg0: i32) -> (i32, i32) {
    %c0_i32 = arith.constant 0 : i32
    %c0_i32_0 = arith.constant 0 : i32
    %c0_i32_1 = arith.constant 0 : i32
    return %c0_i32, %c0_i32_0 : i32, i32
  }
  func.func @transform_3(%arg0: i32) -> (i32, i32) {
    %c0_i32 = arith.constant 0 : i32
    %c0_i32_0 = arith.constant 0 : i32
    %c0_i32_1 = arith.constant 0 : i32
    return %c0_i32, %c0_i32_0 : i32, i32
  }
  func.func @transform_4(%arg0: i32) -> (i32, i32) {
    %c0_i32 = arith.constant 0 : i32
    %c0_i32_0 = arith.constant 0 : i32
    %c0_i32_1 = arith.constant 0 : i32
    return %c0_i32, %c0_i32_0 : i32, i32
  }
  func.func @transform_5(%arg0: i32) -> (i32, i32) {
    %c0_i32 = arith.constant 0 : i32
    %c0_i32_0 = arith.constant 0 : i32
    %c0_i32_1 = arith.constant 0 : i32
    return %c0_i32, %c0_i32_0 : i32, i32
  }
  func.func @transform_6(%arg0: i32) -> (i32, i32) {
    %c0_i32 = arith.constant 0 : i32
    %c0_i32_0 = arith.constant 0 : i32
    %c0_i32_1 = arith.constant 0 : i32
    return %c0_i32, %c0_i32_0 : i32, i32
  }
  func.func @transform_7(%arg0: i32) -> (i32, i32) {
    %c0_i32 = arith.constant 0 : i32
    %c0_i32_0 = arith.constant 0 : i32
    return %arg0, %c0_i32 : i32, i32
  }
  func.func @transform_8(%arg0: i32) -> (i32, i32) {
    %c0_i32 = arith.constant 0 : i32
    %c0_i32_0 = arith.constant 0 : i32
    return %arg0, %c0_i32 : i32, i32
  }
}

</mosaic_0001>

<bundles_post_ra>
// kernel: tpu_custom_call.1
= control target key start
LH: loop header
LB: loop body
LE: loop exit
PB: predicated region body
PF: predicated region fallthrough
CT: control target
= control target key end

     0   :  { %14 = vsyncpa [#allocation3], 0  ;;  %s3925_s0 = inlined_call_operand.vmem [shape: bf16[512,32], index: 0, kind: input, shape index: {}]   ;;  %s3926_s1 = inlined_call_operand.hbm [shape: f32[512,128], index: 1, kind: input, shape index: {}]   ;;  %s3927_s2 = inlined_call_operand.vmem [shape: bf16[32,128], index: 2, kind: input, shape index: {}]   ;;  %s3928_s3 = inlined_call_operand.vmem [shape: bf16[128,128], index: 3, kind: input, shape index: {}]   ;;  %s3929_s4 = inlined_call_operand.vmem [shape: bf16[128,128], index: 4, kind: input, shape index: {}]   ;;  %s3930_s5 = inlined_call_operand.vmem [shape: bf16[32,128], index: 5, kind: input, shape index: {}]   ;;  %s3931_s6 = inlined_call_operand.vmem [shape: f32[1,128], index: 6, kind: input, shape index: {}]   ;;  %s3932_s7 = inlined_call_operand.hbm [shape: f32[512,128], index: 7, kind: output, shape index: {0}]   ;;  %s3933_s8 = inlined_call_operand.hbm [shape: f32[512,128], index: 8, kind: output, shape index: {1}]  }
   0x1   :  { %16 = vsyncpa [#allocation3 + $0x1], 0 }
   0x2   :  { %17 = vsyncpa [#allocation4], 0 }
   0x3   :  { %19 = vsyncpa [#allocation4 + $0x1], 0 }
   0x4   :  { %20 = vsyncpa [#allocation7], 0 }
   0x5   :  { %22 = vsyncpa [#allocation7 + $0x1], 0  ;;  %s2912_s27 = smov 0   ;;  %s2914_s28 = smov 0  }
   0x6   :  { %s2916_s29 = smov 0   ;;  %s2918_s30 = smov 0  }
   0x7 LB: > { %s2933_s9 = sadd.s32 4294967295, %s2858_s30   ;;  %s2061_s10 = sadd.s32 4294967294, %s2858_s30   ;;  %s2858_s30 = sphi %s2918_s30, %s4003_s30   ;;  %s2854_s29 = sphi %s2916_s29, %s4002_s29   ;;  %s2850_s28 = sphi %s2914_s28, %s4001_s28   ;;  %s2846_s27 = sphi %s2912_s27, %s4000_s27  }
   0x8   : > { %s2937_s11 = sadd.s32 1, %s2858_s30   ;;  %s61_s12 = sadd.s32 1, %s2854_s29 }
   0x9   : > { %s58_s13 = ssub.s32 %s2858_s30, %s2937_s11  ;;  %p68_p0 = scmp.ne.s32.totalorder %s2854_s29, %s2850_s28 }
   0xa   : > { %p59_p1 = scmp.eq.s32.totalorder %s58_s13, 0  ;;  %p69_p2 = scmp.eq.s32.totalorder %s2858_s30, 0 }
   0xb   : > { %p74_p3 = scmp.ne.s32.totalorder %s2850_s28, %s2846_s27  ;;  %p75_p4 = scmp.eq.s32.totalorder %s2933_s9, 0 }
   0xc   : > { %s2949_s14 = scalar_select %p59_p1, %s2854_s29, %s61_s12  }
   0xd   : > { %p2951_p5 = por %p69_p2, %p68_p0  ;;  %p2955_p6 = por %p75_p4, %p74_p3 }
   0xe   : > { %3954 = sst [smem:[#allocation11_spill]] %s2949_s14  ;;  %p203_p7 = scmp.eq.s32.totalorder %s2933_s9, 1 }
   0xf   : > { %s3956_s16 = scalar_select %p2955_p6, 1, 0 }
  0x10   : > { %p209_p8 = scmp.eq.s32.totalorder %s2061_s10, 1  ;;  %p2438_p10 = scmp.lt.s32.totalorder %s2858_s30, 2 }
  0x11   : > { %p2962_p11 = por %p203_p7, %p68_p0  ;;  %s279_s19 = sand.u32 1, %s2854_s29  }
  0x12   : > { %p2966_p12 = por %p209_p8, %p74_p3  ;;  %s2150_s20 = sshll.u32 %s2858_s30, 12 }
  0x13   : > { %s3957_s17 = scalar_select %p2962_p11, 1, 0 }
  0x14   : > { %s3958_s18 = scalar_select %p2966_p12, 1, 0 }
  0x15   : > { %s2064_s21 = sshll.u32 %s279_s19, 8  ;;  %s2975_s24 = scalar_lea.hbm %s3926_s1, %s2150_s20 }
  0x16   : > { %s283_s25 = scalar_lea.vmem [#allocation2], %s2064_s21  ;;  %p2979_p13 = pnand %p2438_p10, %p2951_p5 }
  0x17   : > { %s290_s26 = sshll.u32 %s283_s25, 4  ;;  %s2985_s12 = scalar_lea.sflag [#allocation3], %s279_s19  ;;  %s2983_s26 = int_to_ptr.vmem [resolvable:$true] %s290_s26 }
  0x18   : > { %s2736_s13 = scalar_lea.hbm %s2975_s24, 4096  ;;  %p2738_p1 = pneg %p2979_p13 }
  0x19   : > { %p2737_p0 = scmp.ne.s32.totalorder %s2975_s24, %s2736_s13  ;;  %s2741_s21 = scalar_lea.hbm %s3926_s1, 8192 }
  0x1a   : > { %p2742_p4 = scmp.lt.s32.totalorder %s2975_s24, %s3926_s1  ;;  %p2743_p5 = scmp.lt.s32.totalorder %s2741_s21, %s2736_s13 }
  0x1b   : > { %p2739_p2 = pnand %p2738_p1, %p2737_p0 }
  0x1c   : > { %p2744_p7 = por %p2743_p5, %p2742_p4 }
  0x1d   : > { %p2740_p3 = pneg %p2739_p2 }
  0x1f   : > { %p2745_p8 = pnand %p2744_p7, %p2740_p3 }
  0x21   : > { %2748 = shalt.err (!%p2745_p8)
}
  0x22   : > { %s2749_s19 = scalar_lea.vmem %s2983_s26, 4096  ;;  %s2860_s25 = smov [#allocation2]  }
  0x23   : > { %p2750_p10 = scmp.ne.s32.totalorder %s2983_s26, %s2749_s19  ;;  %s2754_s14 = sshll.u32 %s2860_s25, 4  ;;  %s2755_s14 = int_to_ptr.vmem [resolvable:$false] %s2754_s14 }
  0x24   : > { %s2756_s20 = scalar_lea.vmem %s2755_s14, 8192  ;;  %p2757_p2 = scmp.lt.s32.totalorder %s2983_s26, %s2755_s14 }
  0x25   : > { %p2752_p9 = pnand %p2750_p10, %p2738_p1  ;;  %p2758_p12 = scmp.lt.s32.totalorder %s2756_s20, %s2749_s19 }
  0x27   : > { %p2753_p0 = pneg %p2752_p9  ;;  %p2759_p11 = por %p2758_p12, %p2757_p2 }
  0x29   : > { %p2760_p6 = pnand %p2759_p11, %p2753_p0 }
  0x2b   : > { %2763 = shalt.err (!%p2760_p6)
}
  0x2c   : > { %s2861_s13 = smov 128   ;;  %s2862_s22 = smov 8  }
  0x2d   : > { %2430 = dma.hbm_to_vmem [thread:$0]  (!%p2979_p13), %s2975_s24, 4096, %s2983_s26, %s2985_s12, %s2861_s13, %s2861_s13, %s2862_s22  }
  0x2e   : > { %p2067_p9 = scmp.ge.s32.totalorder %s2858_s30, 1  ;;  %p298_p1 = scmp.lt.s32.totalorder %s2858_s30, 3 }
  0x30   : > { %p299_p3 = pnand %p2067_p9, %p298_p1 }
  0x32   : > { %302 = sbr.rel (%p299_p3) target bundleno = 859 (0x35b), region = 48 }
  0x37   : > { %s3009_s14 = sand.u32 1, %s2850_s28   ;;  %p3960_p6 = scmp.ne.s32.totalorder %s3956_s16, 0 }
  0x38   : > { %s3012_s21 = sshll.u32 %s3009_s14, 8  ;;  %s305_s15 = scalar_lea.sflag [#allocation3], %s3009_s14 }
  0x39   : > { %s3016_s23 = scalar_lea.vmem [#allocation2], %s3012_s21 }
  0x3a   : > { %2833 = dma.done.wait (%p3960_p6), %s305_s15, 4096  }
  0x3b   : > { %2835 = vsyncadd (%p3960_p6), %s305_s15, 4294963200  ;;  %s2071_s24 = sshll.u32 %s2933_s9, 5  ;;  %v2476_v0 = vld [vmem:[%s3930_s5 + $0x8] sm:$0xff]   ;;  %v2477_v1 = vld [vmem:[%s3930_s5] sm:$0xff]   ;;  %vm521_vm0 = vcmask 261120   ;;  %s3558_s12 = scalar_lea.vmem [#allocation5], %s3012_s21 }
  0x3c   : > { %p352_p11 = scmp.lt.s32.totalorder %s2071_s24, 63  ;;  %2237 = vmatprep.subr.bf16.mxu0 %v2476_v0  ;;  %v2494_v18 = vld [vmem:[%s3928_s3 + $0x38] sm:$0xff]   ;;  %v2495_v19 = vld [vmem:[%s3928_s3 + $0x30] sm:$0xff]   ;;  %v2496_v20 = vld [vmem:[%s3928_s3 + $0x28] sm:$0xff]   ;;  %s1928_s25 = sshll.u32 %s3558_s12, 4  ;;  %s3810_s25 = int_to_ptr.vmem [resolvable:$true] %s1928_s25 }
  0x3d   : > { %2238 = vmatpush3.bf16.msra.mxu0 %v2476_v0  ;;  %2405 = vmatprep.subr.bf16.mxu1 %v2494_v18  ;;  %v2497_v21 = vld [vmem:[%s3928_s3 + $0x20] sm:$0xff]   ;;  %v2498_v22 = vld [vmem:[%s3928_s3 + $0x18] sm:$0xff]   ;;  %v2499_v23 = vld [vmem:[%s3928_s3 + $0x10] sm:$0xff]   ;;  %s1910_s13 = scalar_lea.sflag [#allocation4], %s3009_s14  ;;  %s2764_s22 = scalar_lea.vmem %s3810_s25, 4096 }
  0x3e   : > { %s4005_s24 = smov (!%p352_p11, %s2071_s24), 63  ;;  %2239 = vmatprep.subr.bf16.mxu0 %v2477_v1  ;;  %2413 = vmatpush3.bf16.msra.mxu1 %v2494_v18  ;;  %v2500_v24 = vld [vmem:[%s3928_s3 + $0x8] sm:$0xff]   ;;  %v3136_v25 = vld [vmem:[%s3016_s23] sm:$0xff]  ;;  %v3146_v32 = vld [vmem:[%s3016_s23 + $0x10] sm:$0xff]  ;;  %p2765_p12 = scmp.ne.s32.totalorder %s3810_s25, %s2764_s22 }
  0x3f   : > { %s2072_s26 = sshll.u32 %s4005_s24, 2  ;;  %2406 = vmatprep.subr.bf16.mxu1 %v2495_v19  ;;  %v394_v26 = vld [vmem:[%s3016_s23 + $0x8] sm:$0xff]  ;;  %v397_v28 = vld [vmem:[%s3016_s23 + $0x20] sm:$0xff]  ;;  %v3149_v33 = vld [vmem:[%s3016_s23 + $0x18] sm:$0xff]  ;;  %p3995_p13 = scmp.ne.s32.totalorder %s3957_s17, 0 }
  0x40   : > { %s3026_s19 = scalar_lea.vmem %s3925_s0, %s2072_s26  ;;  %v1055_v27 = vpack.c.bf16 %v394_v26, %v3136_v25  ;;  %v398_v29 = vld [vmem:[%s3016_s23 + $0x28] sm:$0xff]  ;;  %v2501_v30 = vld [vmem:[%s3928_s3] sm:$0xff]   ;;  %v399_v34 = vld [vmem:[%s3016_s23 + $0x30] sm:$0xff]  ;;  %v1056_v39 = vpack.c.bf16 %v3149_v33, %v3146_v32  ;;  %s2863_s15 = smov [#allocation5]  }
  0x41   : > { %v3035_v2 = vld [vmem:[%s3026_s19] sm:$0xff]   ;;  %v3040_v3 = vld [vmem:[%s3026_s19 + $0x8] sm:$0xff]   ;;  %2240 = vmatpush3.bf16.msra.mxu0 %v2477_v1  ;;  %v3043_v4 = vld [vmem:[%s3026_s19 + $0x10] sm:$0xff]   ;;  %v1057_v31 = vpack.c.bf16 %v398_v29, %v397_v28  ;;  %p2766_p4 = pnand %p2765_p12, %p3995_p13  ;;  %s2768_s24 = sshll.u32 %s2863_s15, 4  ;;  %s2769_s24 = int_to_ptr.vmem [resolvable:$false] %s2768_s24 }
  0x42   : > { %2241 = vmatprep.mubr.msk.bf16.mxu0 %vm521_vm0, %v3035_v2  ;;  %v3050_v5 = vld [vmem:[%s3026_s19 + $0x18] sm:$0xff]   ;;  %v3053_v6 = vld [vmem:[%s3026_s19 + $0x20] sm:$0xff]   ;;  %v3060_v7 = vld [vmem:[%s3026_s19 + $0x28] sm:$0xff]   ;;  %2273 = vmatprep.subr.bf16.mxu0 %v2494_v18  ;;  %s2770_s26 = scalar_lea.vmem %s2769_s24, 8192  ;;  %p2771_p7 = scmp.lt.s32.totalorder %s3810_s25, %s2769_s24 }
  0x43   : > { %v3063_v8 = vld [vmem:[%s3026_s19 + $0x30] sm:$0xff]   ;;  %v3070_v9 = vld [vmem:[%s3026_s19 + $0x38] sm:$0xff]   ;;  %v3073_v10 = vld [vmem:[%s3026_s19 + $0x40] sm:$0xff]   ;;  %2414 = vmatpush3.bf16.msra.mxu1 %v2495_v19  ;;  %2293 = vmatprep.mubr.bf16.mxu1 %v1057_v31  ;;  %p2767_p5 = pneg %p2766_p4  ;;  %p2772_p8 = scmp.lt.s32.totalorder %s2770_s26, %s2764_s22 }
  0x44   : > { %2242 = vmatmul.mubr.msk.bf16.vlgmr.msra.gmra.mxu0 %vm521_vm0, %v3040_v3  ;;  %v3080_v11 = vld [vmem:[%s3026_s19 + $0x48] sm:$0xff]   ;;  %v3083_v12 = vld [vmem:[%s3026_s19 + $0x50] sm:$0xff]   ;;  %v3090_v13 = vld [vmem:[%s3026_s19 + $0x58] sm:$0xff]   ;;  %2407 = vmatprep.subr.bf16.mxu1 %v2496_v20 }
  0x45   : > { %2245 = vmatprep.mubr.msk.bf16.mxu0 %vm521_vm0, %v3043_v4  ;;  %v3093_v14 = vld [vmem:[%s3026_s19 + $0x60] sm:$0xff]   ;;  %v3100_v15 = vld [vmem:[%s3026_s19 + $0x68] sm:$0xff]   ;;  %v3103_v16 = vld [vmem:[%s3026_s19 + $0x70] sm:$0xff]   ;;  %2274 = vmatpush3.bf16.msra.mxu0 %v2494_v18  ;;  %p2773_p10 = por %p2772_p8, %p2771_p7 }
  0x46   : > { %v3110_v17 = vld [vmem:[%s3026_s19 + $0x78] sm:$0xff]   ;;  %2275 = vmatprep.subr.bf16.mxu0 %v2495_v19  ;;  %v2502_v36 = vld [vmem:[%s3927_s2 + $0x8] sm:$0xff]   ;;  %v401_v37 = vld [vmem:[%s3016_s23 + $0x40] sm:$0xff]  ;;  %s3953_s19 = sshll.u32 %s2933_s9, 12 }
  0x47   : > { %2415 = vmatpush3.bf16.msra.mxu1 %v2496_v20  ;;  %v400_v35 = vld [vmem:[%s3016_s23 + $0x38] sm:$0xff]  ;;  %v402_v38 = vld [vmem:[%s3016_s23 + $0x48] sm:$0xff]  ;;  %v2503_v41 = vld [vmem:[%s3927_s2] sm:$0xff]   ;;  %s3808_s16 = scalar_lea.hbm %s3932_s7, %s3953_s19  ;;  %p2774_p0 = pnand %p2773_p10, %p2767_p5 }
  0x48   : > { %2408 = vmatprep.subr.bf16.mxu1 %v2497_v21  ;;  %v1058_v40 = vpack.c.bf16 %v400_v35, %v399_v34  ;;  %v1059_v42 = vpack.c.bf16 %v402_v38, %v401_v37  ;;  %v403_v43 = vld [vmem:[%s3016_s23 + $0x50] sm:$0xff]  ;;  %v404_v44 = vld [vmem:[%s3016_s23 + $0x58] sm:$0xff]  ;;  %v405_v45 = vld [vmem:[%s3016_s23 + $0x60] sm:$0xff] }
  0x49   : > { %2276 = vmatpush3.bf16.msra.mxu0 %v2495_v19  ;;  %v406_v46 = vld [vmem:[%s3016_s23 + $0x68] sm:$0xff]  ;;  %v1060_v47 = vpack.c.bf16 %v404_v44, %v403_v43  ;;  %v407_v49 = vld [vmem:[%s3016_s23 + $0x70] sm:$0xff]  ;;  %v408_v50 = vld [vmem:[%s3016_s23 + $0x78] sm:$0xff] }
  0x4a   : > { %2277 = vmatprep.subr.bf16.mxu0 %v2496_v20  ;;  %v1061_v48 = vpack.c.bf16 %v406_v46, %v405_v45  ;;  %v409_v51 = vld [vmem:[%s3016_s23 + $0x80] sm:$0xff]  ;;  %v410_v52 = vld [vmem:[%s3016_s23 + $0x88] sm:$0xff]  ;;  %v1062_v53 = vpack.c.bf16 %v408_v50, %v407_v49  ;;  %v411_v55 = vld [vmem:[%s3016_s23 + $0x90] sm:$0xff] }
  0x4b   : > { %2416 = vmatpush3.bf16.msra.mxu1 %v2497_v21  ;;  %v1063_v54 = vpack.c.bf16 %v410_v52, %v409_v51  ;;  %v412_v56 = vld [vmem:[%s3016_s23 + $0x98] sm:$0xff]  ;;  %v413_v57 = vld [vmem:[%s3016_s23 + $0xa0] sm:$0xff]  ;;  %v414_v58 = vld [vmem:[%s3016_s23 + $0xa8] sm:$0xff] }
  0x4c   : > { %2246 = vmatmul.mubr.msk.bf16.gmra.mxu0 %vm521_vm0, %v3050_v5  ;;  %2409 = vmatprep.subr.bf16.mxu1 %v2498_v22  ;;  %v1064_v59 = vpack.c.bf16 %v412_v56, %v411_v55  ;;  %v1065_v60 = vpack.c.bf16 %v414_v58, %v413_v57  ;;  %v415_v61 = vld [vmem:[%s3016_s23 + $0xb0] sm:$0xff]  ;;  %v416_v62 = vld [vmem:[%s3016_s23 + $0xb8] sm:$0xff]  ;;  %v421_v18 = vld [vmem:[%s3016_s23 + $0xe0] sm:$0xff] }
  0x4d   : > { %2249 = vmatprep.mubr.msk.bf16.mxu0 %vm521_vm0, %v3053_v6  ;;  %2278 = vmatpush3.bf16.msra.mxu0 %v2496_v20  ;;  %v1066_v63 = vpack.c.bf16 %v416_v62, %v415_v61  ;;  %v422_v19 = vld [vmem:[%s3016_s23 + $0xe8] sm:$0xff]  ;;  %v2507_v50 = vld [vmem:[%s3929_s4 + $0x20] sm:$0xff]  }
  0x4e   : > { %2279 = vmatprep.subr.bf16.mxu0 %v2497_v21  ;;  %v2506_v49 = vld [vmem:[%s3929_s4 + $0x28] sm:$0xff]  }
  0x4f   : > { %2417 = vmatpush3.bf16.msra.mxu1 %v2498_v22 }
  0x50   : > { %2410 = vmatprep.subr.bf16.mxu1 %v2499_v23 }
  0x51   : > { %2280 = vmatpush3.bf16.msra.mxu0 %v2497_v21  ;;  %v1069_v21 = vpack.c.bf16 %v422_v19, %v421_v18 }
  0x52   : > { %2281 = vmatprep.subr.bf16.mxu0 %v2498_v22 }
  0x53   : > { %2418 = vmatpush3.bf16.msra.mxu1 %v2499_v23 }
  0x54   : > { %2250 = vmatmul.mubr.msk.bf16.gmra.mxu0 %vm521_vm0, %v3060_v7  ;;  %2411 = vmatprep.subr.bf16.mxu1 %v2500_v24 }
  0x55   : > { %2253 = vmatprep.mubr.msk.bf16.mxu0 %vm521_vm0, %v3063_v8  ;;  %2282 = vmatpush3.bf16.msra.mxu0 %v2498_v22  ;;  %v423_v22 = vld [vmem:[%s3016_s23 + $0xf0] sm:$0xff] }
  0x56   : > { %2283 = vmatprep.subr.bf16.mxu0 %v2499_v23 }
  0x57   : > { %2419 = vmatpush3.bf16.msra.mxu1 %v2500_v24 }
  0x58   : > { %2412 = vmatprep.subr.bf16.mxu1 %v2501_v30 }
  0x59   : > { %2284 = vmatpush3.bf16.msra.mxu0 %v2499_v23  ;;  %v424_v23 = vld [vmem:[%s3016_s23 + $0xf8] sm:$0xff] }
  0x5a   : > { %2285 = vmatprep.subr.bf16.mxu0 %v2500_v24 }
  0x5b   : > { %2420 = vmatpush3.bf16.msra.mxu1 %v2501_v30 }
  0x5c   : > { %2254 = vmatmul.mubr.msk.bf16.gmra.mxu0 %vm521_vm0, %v3070_v9 }
  0x5d   : > { %2257 = vmatprep.mubr.msk.bf16.mxu0 %vm521_vm0, %v3073_v10  ;;  %2286 = vmatpush3.bf16.msra.mxu0 %v2500_v24  ;;  %v1070_v24 = vpack.c.bf16 %v424_v23, %v423_v22 }
  0x5e   : > { %2287 = vmatprep.subr.bf16.mxu0 %v2501_v30  ;;  %2294 = vmatmul.mubr.bf16.vlgmr.msra.gmra.mxu1 %v1058_v40 }
  0x5f   : > { %2297 = vmatprep.mubr.bf16.mxu1 %v1059_v42 }
  0x61   : > { %2288 = vmatpush3.bf16.msra.mxu0 %v2501_v30 }
  0x62   : > { %2321 = vmatprep.subr.bf16.mxu0 %v2502_v36 }
  0x64   : > { %2258 = vmatmul.mubr.msk.bf16.gmra.mxu0 %vm521_vm0, %v3080_v11 }
  0x65   : > { %2261 = vmatprep.mubr.msk.bf16.mxu0 %vm521_vm0, %v3083_v12 }
  0x66   : > { %2298 = vmatmul.mubr.bf16.gmra.mxu1 %v1060_v47  ;;  %v2504_v47 = vld [vmem:[%s3929_s4 + $0x38] sm:$0xff]  }
  0x67   : > { %2301 = vmatprep.mubr.bf16.mxu1 %v1061_v48  ;;  %v2505_v48 = vld [vmem:[%s3929_s4 + $0x30] sm:$0xff]   ;;  %2357 = vmatprep.subr.bf16.mxu1 %v2504_v47 }
  0x68   : > { %2358 = vmatpush3.bf16.msra.mxu1 %v2504_v47 }
  0x69   : > { %2359 = vmatprep.subr.bf16.mxu1 %v2505_v48 }
  0x6c   : > { %2262 = vmatmul.mubr.msk.bf16.gmra.mxu0 %vm521_vm0, %v3090_v13  ;;  %2360 = vmatpush3.bf16.msra.mxu1 %v2505_v48 }
  0x6d   : > { %2265 = vmatprep.mubr.msk.bf16.mxu0 %vm521_vm0, %v3093_v14  ;;  %2361 = vmatprep.subr.bf16.mxu1 %v2506_v49 }
  0x6e   : > { %2302 = vmatmul.mubr.bf16.gmra.mxu1 %v1062_v53 }
  0x6f   : > { %2305 = vmatprep.mubr.bf16.mxu1 %v1063_v54 }
  0x70   : > { %2362 = vmatpush3.bf16.msra.mxu1 %v2506_v49 }
  0x71   : > { %2363 = vmatprep.subr.bf16.mxu1 %v2507_v50 }
  0x74   : > { %2266 = vmatmul.mubr.msk.bf16.gmra.mxu0 %vm521_vm0, %v3100_v15  ;;  %2364 = vmatpush3.bf16.msra.mxu1 %v2507_v50 }
  0x75   : > { %2269 = vmatprep.mubr.msk.bf16.mxu0 %vm521_vm0, %v3103_v16 }
  0x76   : > { %2306 = vmatmul.mubr.bf16.gmra.mxu1 %v1064_v59 }
  0x77   : > { %2309 = vmatprep.mubr.bf16.mxu1 %v1065_v60 }
  0x7c   : > { %2270 = vmatmul.mubr.msk.bf16.gmra.mxu0 %vm521_vm0, %v3110_v17 }
  0x7d   : > { %2289 = vmatprep.mubr.bf16.mxu0 %v1055_v27 }
  0x7e   : > { %2310 = vmatmul.mubr.bf16.gmra.mxu1 %v1066_v63 }
  0x84   : > { %2290 = vmatmul.mubr.bf16.vlgmr.msra.gmra.mxu0 %v1056_v39 }
  0x85   : > { %2322 = vmatpush3.bf16.msra.mxu0 %v2502_v36  ;;  %2325 = vmatprep.mubr.msk.bf16.mxu0 %vm521_vm0, %v3035_v2 }
  0x86   : > { %2323 = vmatprep.subr.bf16.mxu0 %v2503_v41 }
  0x89   : > { %2324 = vmatpush3.bf16.msra.mxu0 %v2503_v41 }
  0x8c   : > { %2326 = vmatmul.mubr.msk.bf16.vlgmr.msra.gmra.mxu0 %vm521_vm0, %v3040_v3 }
  0x8d   : > { %2329 = vmatprep.mubr.msk.bf16.mxu0 %vm521_vm0, %v3043_v4 }
  0x94   : > { %2330 = vmatmul.mubr.msk.bf16.gmra.mxu0 %vm521_vm0, %v3050_v5 }
  0x95   : > { %2333 = vmatprep.mubr.msk.bf16.mxu0 %vm521_vm0, %v3053_v6 }
  0x9c   : > { %2334 = vmatmul.mubr.msk.bf16.gmra.mxu0 %vm521_vm0, %v3060_v7  ;;  %v417_v7 = vld [vmem:[%s3016_s23 + $0xc0] sm:$0xff] }
  0x9d   : > { %2337 = vmatprep.mubr.msk.bf16.mxu0 %vm521_vm0, %v3063_v8  ;;  %v418_v8 = vld [vmem:[%s3016_s23 + $0xc8] sm:$0xff] }
  0xa4   : > { %2338 = vmatmul.mubr.msk.bf16.gmra.mxu0 %vm521_vm0, %v3070_v9 }
  0xa5   : > { %2341 = vmatprep.mubr.msk.bf16.mxu0 %vm521_vm0, %v3073_v10  ;;  %v1067_v10 = vpack.c.bf16 %v418_v8, %v417_v7 }
  0xa7   : > { %2313 = vmatprep.mubr.bf16.mxu1 %v1067_v10 }
  0xac   : > { %2342 = vmatmul.mubr.msk.bf16.gmra.mxu0 %vm521_vm0, %v3080_v11  ;;  %v419_v11 = vld [vmem:[%s3016_s23 + $0xd0] sm:$0xff] }
  0xad   : > { %2345 = vmatprep.mubr.msk.bf16.mxu0 %vm521_vm0, %v3083_v12  ;;  %v420_v12 = vld [vmem:[%s3016_s23 + $0xd8] sm:$0xff] }
  0xb4   : > { %2346 = vmatmul.mubr.msk.bf16.gmra.mxu0 %vm521_vm0, %v3090_v13  ;;  %v1068_v13 = vpack.c.bf16 %v420_v12, %v419_v11 }
  0xb5   : > { %2349 = vmatprep.mubr.msk.bf16.mxu0 %vm521_vm0, %v3093_v14 }
  0xb6   : > { %2314 = vmatmul.mubr.bf16.gmra.mxu1 %v1068_v13 }
  0xb7   : > { %2317 = vmatprep.mubr.bf16.mxu1 %v1069_v21 }
  0xbc   : > { %2350 = vmatmul.mubr.msk.bf16.gmra.mxu0 %vm521_vm0, %v3100_v15 }
  0xbd   : > { %2353 = vmatprep.mubr.msk.bf16.mxu0 %vm521_vm0, %v3103_v16 }
  0xbe   : > { %2318 = vmatmul.mubr.bf16.gmra.mxu1 %v1070_v24 }
  0xc4   : > { %2354 = vmatmul.mubr.msk.bf16.gmra.mxu0 %vm521_vm0, %v3110_v17 }
 0x104   : > { %v3199_v0 = vpop.f32.mrf.mxu0 }
 0x105   : > { %735 = vmax.xlane.f32.xlu1 %v3199_v0 }
 0x106   : > { %v3204_v1 = vpop.f32.mrf.mxu0 }
 0x107   : > { %731 = vmax.xlane.f32.xlu0 %v3204_v1 }
 0x108   : > { %v3209_v2 = vpop.f32.mrf.mxu0 }
 0x109   : > { %737 = vmax.xlane.f32.xlu1 %v3209_v2 }
 0x10a   : > { %v3212_v3 = vpop.f32.mrf.mxu0 }
 0x10b   : > { %733 = vmax.xlane.f32.xlu0 %v3212_v3 }
 0x10c   : > { %v3215_v4 = vpop.f32.mrf.mxu0 }
 0x10e   : > { %v3219_v5 = vpop.f32.mrf.mxu0 }
 0x10f   : > { %739 = vmax.xlane.f32.xlu0 %v3219_v5 }
 0x110   : > { %v3224_v6 = vpop.f32.mrf.mxu0 }
 0x112   : > { %v3228_v9 = vpop.f32.mrf.mxu0 }
 0x113   : > { %743 = vmax.xlane.f32.xlu0 %v3215_v4  ;;  %741 = vmax.xlane.f32.xlu1 %v3228_v9 }
 0x114   : > { %v3234_v14 = vpop.f32.mrf.mxu0 }
 0x116   : > { %v3238_v15 = vpop.f32.mrf.mxu0 }
 0x117   : > { %745 = vmax.xlane.f32.xlu1 %v3224_v6  ;;  %747 = vmax.xlane.f32.xlu0 %v3238_v15 }
 0x118   : > { %v3242_v16 = vpop.f32.mrf.mxu0 }
 0x11a   : > { %v3246_v20 = vpop.f32.mrf.mxu0 }
 0x11b   : > { %751 = vmax.xlane.f32.xlu0 %v3234_v14  ;;  %749 = vmax.xlane.f32.xlu1 %v3246_v20 }
 0x11c   : > { %v3252_v17 = vpop.f32.mrf.mxu0 }
 0x11e   : > { %v3254_v26 = vpop.f32.mrf.mxu0 }
 0x11f   : > { %753 = vmax.xlane.f32.xlu1 %v3242_v16  ;;  %755 = vmax.xlane.f32.xlu0 %v3254_v26 }
 0x120   : > { %v3258_v27 = vpop.f32.mrf.mxu0 }
 0x122   : > { %v3260_v28 = vpop.f32.mrf.mxu0 }
 0x123   : > { %759 = vmax.xlane.f32.xlu0 %v3252_v17  ;;  %757 = vmax.xlane.f32.xlu1 %v3260_v28 }
 0x124   : > { %v3264_v29 = vpop.f32.mrf.mxu0 }
 0x126   : > { %v3266_v30 = vpop.f32.mrf.mxu0 }
 0x127   : > { %761 = vmax.xlane.f32.xlu1 %v3258_v27  ;;  %763 = vmax.xlane.f32.xlu0 %v3266_v30 }
 0x128   : > { %v3270_v31 = vpop.f32.mrf.mxu0 }
 0x12a   : > { %v3272_v34 = vpop.f32.mrf.mxu0 }
 0x12b   : > { %767 = vmax.xlane.f32.xlu0 %v3264_v29  ;;  %765 = vmax.xlane.f32.xlu1 %v3272_v34 }
 0x12c   : > { %v3276_v35 = vpop.f32.mrf.mxu0 }
 0x12e   : > { %v3278_v36 = vpop.f32.mrf.mxu0 }
 0x12f   : > { %769 = vmax.xlane.f32.xlu1 %v3270_v31  ;;  %771 = vmax.xlane.f32.xlu0 %v3278_v36 }
 0x130   : > { %v3282_v37 = vpop.f32.mrf.mxu0 }
 0x132   : > { %v3284_v38 = vpop.f32.mrf.mxu0 }
 0x133   : > { %775 = vmax.xlane.f32.xlu0 %v3276_v35  ;;  %773 = vmax.xlane.f32.xlu1 %v3284_v38 }
 0x134   : > { %v3288_v39 = vpop.f32.mrf.mxu0 }
 0x136   : > { %v3290_v40 = vpop.f32.mrf.mxu0 }
 0x137   : > { %777 = vmax.xlane.f32.xlu1 %v3282_v37  ;;  %779 = vmax.xlane.f32.xlu0 %v3290_v40 }
 0x138   : > { %v3294_v41 = vpop.f32.mrf.mxu0 }
 0x13a   : > { %v3296_v42 = vpop.f32.mrf.mxu0 }
 0x13b   : > { %783 = vmax.xlane.f32.xlu0 %v3288_v39  ;;  %781 = vmax.xlane.f32.xlu1 %v3296_v42 }
 0x13c   : > { %v3300_v43 = vpop.f32.mrf.mxu0 }
 0x13e   : > { %v3302_v44 = vpop.f32.mrf.mxu0 }
 0x13f   : > { %785 = vmax.xlane.f32.xlu1 %v3294_v41  ;;  %787 = vmax.xlane.f32.xlu0 %v3302_v44 }
 0x140   : > { %v3306_v45 = vpop.f32.mrf.mxu0 }
 0x142   : > { %v3308_v46 = vpop.f32.mrf.mxu0 }
 0x143   : > { %791 = vmax.xlane.f32.xlu0 %v3300_v43  ;;  %789 = vmax.xlane.f32.xlu1 %v3308_v46 }
 0x147   : > { %793 = vmax.xlane.f32.xlu1 %v3306_v45 }
 0x18e   : > { %v736_v51 = vpop.xlane.xlu1 %735 }
 0x18f   : > { %v797_v52 = vsub.f32 %v3199_v0, %v736_v51 }
 0x190   : > { %v732_v53 = vpop.xlane.xlu0 %731 }
 0x191   : > { %v795_v54 = vsub.f32 %v3204_v1, %v732_v53  ;;  %v831_v57 = vmul.f32 1.442695, %v797_v52 }
 0x192   : > { %v738_v55 = vpop.xlane.xlu1 %737 }
 0x193   : > { %v827_v56 = vmul.f32 1.442695, %v795_v54  ;;  %v798_v58 = vsub.f32 %v3209_v2, %v738_v55 }
 0x194   : > { %v734_v59 = vpop.xlane.xlu0 %733 }
 0x195   : > { %2512 = vpow2.f32 %v827_v56  ;;  %v796_v60 = vsub.f32 %v3212_v3, %v734_v59  ;;  %v833_v62 = vmul.f32 1.442695, %v798_v58 }
 0x196   : > { %2514 = vpow2.f32 %v831_v57 }
 0x197   : > { %v829_v61 = vmul.f32 1.442695, %v796_v60 }
 0x198   : > { %v740_v63 = vpop.xlane.xlu0 %739 }
 0x199   : > { %2516 = vpow2.f32 %v829_v61  ;;  %v799_v7 = vsub.f32 %v3219_v5, %v740_v63 }
 0x19a   : > { %2518 = vpow2.f32 %v833_v62 }
 0x19b   : > { %v835_v0 = vmul.f32 1.442695, %v799_v7 }
 0x19c   : > { %v744_v8 = vpop.xlane.xlu0 %743  ;;  %v742_v1 = vpop.xlane.xlu1 %741 }
 0x19d   : > { %2520 = vpow2.f32 %v835_v0  ;;  %v801_v10 = vsub.f32 %v3215_v4, %v744_v8  ;;  %v800_v2 = vsub.f32 %v3228_v9, %v742_v1 }
 0x19f   : > { %v839_v11 = vmul.f32 1.442695, %v801_v10  ;;  %v837_v12 = vmul.f32 1.442695, %v800_v2 }
 0x1a0   : > { %v746_v13 = vpop.xlane.xlu1 %745  ;;  %v748_v3 = vpop.xlane.xlu0 %747 }
 0x1a1   : > { %2522 = vpow2.f32 %v839_v11  ;;  %v802_v18 = vsub.f32 %v3224_v6, %v746_v13  ;;  %v803_v19 = vsub.f32 %v3238_v15, %v748_v3 }
 0x1a2   : > { %v3334_v21 = vpop.eup %2512  ;;  %2524 = vpow2.f32 %v837_v12 }
 0x1a3   : > { %v841_v5 = vmul.f32 1.442695, %v802_v18  ;;  %v843_v22 = vmul.f32 1.442695, %v803_v19  ;;  %891 = vadd.xlane.f32.xlu0 %v3334_v21  ;;  %v3337_v24 = vpop.eup %2514 }
 0x1a4   : > { %v752_v23 = vpop.xlane.xlu0 %751  ;;  %v750_v4 = vpop.xlane.xlu1 %749 }
 0x1a5   : > { %2526 = vpow2.f32 %v841_v5  ;;  %v805_v9 = vsub.f32 %v3234_v14, %v752_v23  ;;  %v804_v47 = vsub.f32 %v3246_v20, %v750_v4 }
 0x1a6   : > { %v3341_v48 = vpop.eup %2516  ;;  %2528 = vpow2.f32 %v843_v22 }
 0x1a7   : > { %v847_v6 = vmul.f32 1.442695, %v805_v9  ;;  %v845_v15 = vmul.f32 1.442695, %v804_v47  ;;  %895 = vadd.xlane.f32.xlu0 %v3337_v24  ;;  %893 = vadd.xlane.f32.xlu1 %v3341_v48  ;;  %v3345_v51 = vpop.eup %2518  ;;  %v2508_v47 = vld [vmem:[%s3929_s4 + $0x18] sm:$0xff]  }
 0x1a8   : > { %v754_v49 = vpop.xlane.xlu1 %753  ;;  %v756_v50 = vpop.xlane.xlu0 %755  ;;  %2365 = vmatprep.subr.bf16.mxu1 %v2508_v47 }
 0x1a9   : > { %2530 = vpow2.f32 %v847_v6  ;;  %v806_v52 = vsub.f32 %v3242_v16, %v754_v49  ;;  %v807_v14 = vsub.f32 %v3254_v26, %v756_v50  ;;  %2366 = vmatpush3.bf16.msra.mxu1 %v2508_v47 }
 0x1aa   : > { %v3349_v53 = vpop.eup %2520  ;;  %2532 = vpow2.f32 %v845_v15 }
 0x1ab   : > { %v849_v20 = vmul.f32 1.442695, %v806_v52  ;;  %v851_v54 = vmul.f32 1.442695, %v807_v14  ;;  %899 = vadd.xlane.f32.xlu0 %v3349_v53  ;;  %897 = vadd.xlane.f32.xlu1 %v3345_v51 }
 0x1ac   : > { %v760_v55 = vpop.xlane.xlu0 %759  ;;  %v758_v56 = vpop.xlane.xlu1 %757 }
 0x1ad   : > { %2534 = vpow2.f32 %v849_v20  ;;  %v809_v57 = vsub.f32 %v3252_v17, %v760_v55  ;;  %v808_v58 = vsub.f32 %v3260_v28, %v758_v56 }
 0x1ae   : > { %v3355_v59 = vpop.eup %2522  ;;  %2536 = vpow2.f32 %v851_v54 }
 0x1af   : > { %v3357_v16 = vpop.eup %2524  ;;  %v855_v26 = vmul.f32 1.442695, %v809_v57  ;;  %v853_v60 = vmul.f32 1.442695, %v808_v58  ;;  %903 = vadd.xlane.f32.xlu0 %v3355_v59 }
 0x1b0   : > { %901 = vadd.xlane.f32.xlu1 %v3357_v16  ;;  %v762_v61 = vpop.xlane.xlu1 %761  ;;  %v764_v62 = vpop.xlane.xlu0 %763 }
 0x1b1   : > { %2538 = vpow2.f32 %v855_v26  ;;  %v810_v63 = vsub.f32 %v3258_v27, %v762_v61  ;;  %v811_v17 = vsub.f32 %v3266_v30, %v764_v62 }
 0x1b2   : > { %v3363_v7 = vpop.eup %2526  ;;  %2540 = vpow2.f32 %v853_v60  ;;  %v2510_v60 = vld [vmem:[%s3929_s4 + $0x8] sm:$0xff]  }
 0x1b3   : > { %v3365_v28 = vpop.eup %2528  ;;  %v857_v0 = vmul.f32 1.442695, %v810_v63  ;;  %v859_v8 = vmul.f32 1.442695, %v811_v17 }
 0x1b4   : > { %907 = vadd.xlane.f32.xlu0 %v3365_v28  ;;  %905 = vadd.xlane.f32.xlu1 %v3363_v7  ;;  %v768_v1 = vpop.xlane.xlu0 %767  ;;  %v766_v10 = vpop.xlane.xlu1 %765 }
 0x1b5   : > { %2542 = vpow2.f32 %v857_v0  ;;  %v813_v2 = vsub.f32 %v3264_v29, %v768_v1  ;;  %v812_v27 = vsub.f32 %v3272_v34, %v766_v10  ;;  %v2511_v1 = vld [vmem:[%s3929_s4] sm:$0xff]  }
 0x1b6   : > { %v3371_v11 = vpop.eup %2530  ;;  %2544 = vpow2.f32 %v859_v8 }
 0x1b7   : > { %v3373_v30 = vpop.eup %2532  ;;  %v863_v12 = vmul.f32 1.442695, %v813_v2  ;;  %v861_v13 = vmul.f32 1.442695, %v812_v27 }
 0x1b8   : > { %911 = vadd.xlane.f32.xlu0 %v3371_v11  ;;  %909 = vadd.xlane.f32.xlu1 %v3373_v30  ;;  %v770_v3 = vpop.xlane.xlu1 %769  ;;  %v772_v18 = vpop.xlane.xlu0 %771 }
 0x1b9   : > { %2546 = vpow2.f32 %v863_v12  ;;  %v814_v19 = vsub.f32 %v3270_v31, %v770_v3  ;;  %v815_v29 = vsub.f32 %v3278_v36, %v772_v18 }
 0x1ba   : > { %v3379_v5 = vpop.eup %2534  ;;  %2548 = vpow2.f32 %v861_v13 }
 0x1bb   : > { %v3381_v34 = vpop.eup %2536  ;;  %v865_v22 = vmul.f32 1.442695, %v814_v19  ;;  %v867_v23 = vmul.f32 1.442695, %v815_v29 }
 0x1bc   : > { %915 = vadd.xlane.f32.xlu0 %v3381_v34  ;;  %913 = vadd.xlane.f32.xlu1 %v3379_v5  ;;  %v776_v4 = vpop.xlane.xlu0 %775  ;;  %v774_v9 = vpop.xlane.xlu1 %773 }
 0x1bd   : > { %2550 = vpow2.f32 %v865_v22  ;;  %v817_v31 = vsub.f32 %v3276_v35, %v776_v4  ;;  %v816_v36 = vsub.f32 %v3284_v38, %v774_v9  ;;  %v2509_v35 = vld [vmem:[%s3929_s4 + $0x10] sm:$0xff]  }
 0x1be   : > { %v3390_v6 = vpop.eup %2538  ;;  %2552 = vpow2.f32 %v867_v23  ;;  %2367 = vmatprep.subr.bf16.mxu1 %v2509_v35 }
 0x1bf   : > { %v3392_v15 = vpop.eup %2540  ;;  %v871_v49 = vmul.f32 1.442695, %v817_v31  ;;  %v869_v50 = vmul.f32 1.442695, %v816_v36  ;;  %2368 = vmatpush3.bf16.msra.mxu1 %v2509_v35 }
 0x1c0   : > { %919 = vadd.xlane.f32.xlu0 %v3390_v6  ;;  %917 = vadd.xlane.f32.xlu1 %v3392_v15  ;;  %v778_v52 = vpop.xlane.xlu1 %777  ;;  %v780_v14 = vpop.xlane.xlu0 %779 }
 0x1c1   : > { %2554 = vpow2.f32 %v871_v49  ;;  %v818_v38 = vsub.f32 %v3282_v37, %v778_v52  ;;  %v819_v20 = vsub.f32 %v3290_v40, %v780_v14  ;;  %2369 = vmatprep.subr.bf16.mxu1 %v2510_v60 }
 0x1c2   : > { %v3401_v54 = vpop.eup %2542  ;;  %2556 = vpow2.f32 %v869_v50 }
 0x1c3   : > { %3961 = vst [vmem:[#allocation12_spill] sm:$0xff] %v3401_v54  ;;  %v3403_v55 = vpop.eup %2544  ;;  %v873_v56 = vmul.f32 1.442695, %v818_v38  ;;  %v875_v57 = vmul.f32 1.442695, %v819_v20  ;;  %2370 = vmatpush3.bf16.msra.mxu1 %v2510_v60 }
 0x1c4   : > { %3962 = vst [vmem:[#allocation13_spill] sm:$0xff] %v3403_v55  ;;  %923 = vadd.xlane.f32.xlu0 %v3403_v55  ;;  %921 = vadd.xlane.f32.xlu1 %v3401_v54  ;;  %v784_v58 = vpop.xlane.xlu0 %783  ;;  %v782_v26 = vpop.xlane.xlu1 %781 }
 0x1c5   : > { %2558 = vpow2.f32 %v873_v56  ;;  %v821_v37 = vsub.f32 %v3288_v39, %v784_v58  ;;  %v820_v40 = vsub.f32 %v3296_v42, %v782_v26  ;;  %2371 = vmatprep.subr.bf16.mxu1 %v2511_v1  ;;  %v2295_v26 = vpop.f32.mrf.mxu1 }
 0x1c6   : > { %v3412_v61 = vpop.eup %2546  ;;  %2560 = vpow2.f32 %v875_v57 }
 0x1c7   : > { %3963 = vst [vmem:[#allocation14_spill] sm:$0xff] %v3412_v61  ;;  %v3414_v62 = vpop.eup %2548  ;;  %v879_v63 = vmul.f32 1.442695, %v821_v37  ;;  %v877_v17 = vmul.f32 1.442695, %v820_v40  ;;  %2372 = vmatpush3.bf16.msra.mxu1 %v2511_v1  ;;  %v1192_v40 = vpop.f32.mrf.mxu1 }
 0x1c8   : > { %3964 = vst [vmem:[#allocation15_spill] sm:$0xff] %v3414_v62  ;;  %927 = vadd.xlane.f32.xlu0 %v3412_v61  ;;  %925 = vadd.xlane.f32.xlu1 %v3414_v62  ;;  %v786_v0 = vpop.xlane.xlu1 %785  ;;  %v788_v39 = vpop.xlane.xlu0 %787 }
 0x1c9   : > { %2562 = vpow2.f32 %v879_v63  ;;  %v822_v42 = vsub.f32 %v3294_v41, %v786_v0  ;;  %v823_v8 = vsub.f32 %v3302_v44, %v788_v39  ;;  %v2296_v63 = vpop.f32.mrf.mxu1 }
 0x1ca   : > { %v3423_v10 = vpop.eup %2550  ;;  %2564 = vpow2.f32 %v877_v17 }
 0x1cb   : > { %3965 = vst [vmem:[#allocation16_spill] sm:$0xff] %v3423_v10  ;;  %v3425_v2 = vpop.eup %2552  ;;  %v881_v27 = vmul.f32 1.442695, %v822_v42  ;;  %v883_v12 = vmul.f32 1.442695, %v823_v8  ;;  %v1195_v0 = vpop.f32.mrf.mxu1 }
 0x1cc   : > { %3966 = vst [vmem:[#allocation17_spill] sm:$0xff] %v3425_v2  ;;  %931 = vadd.xlane.f32.xlu0 %v3425_v2  ;;  %929 = vadd.xlane.f32.xlu1 %v3423_v10  ;;  %v792_v41 = vpop.xlane.xlu0 %791  ;;  %v790_v13 = vpop.xlane.xlu1 %789 }
 0x1cd   : > { %2566 = vpow2.f32 %v881_v27  ;;  %v825_v44 = vsub.f32 %v3300_v43, %v792_v41  ;;  %v824_v3 = vsub.f32 %v3308_v46, %v790_v13  ;;  %v2299_v42 = vpop.f32.mrf.mxu1 }
 0x1ce   : > { %v3431_v18 = vpop.eup %2554  ;;  %2568 = vpow2.f32 %v883_v12 }
 0x1cf   : > { %3967 = vst [vmem:[#allocation18_spill] sm:$0xff] %v3431_v18  ;;  %v3433_v19 = vpop.eup %2556  ;;  %v887_v29 = vmul.f32 1.442695, %v825_v44  ;;  %v885_v22 = vmul.f32 1.442695, %v824_v3  ;;  %v1208_v1 = vpop.f32.mrf.mxu1 }
 0x1d0   : > { %3968 = vst [vmem:[#allocation19_spill] sm:$0xff] %v3433_v19  ;;  %935 = vadd.xlane.f32.xlu0 %v3431_v18  ;;  %933 = vadd.xlane.f32.xlu1 %v3433_v19  ;;  %v794_v23 = vpop.xlane.xlu1 %793 }
 0x1d1   : > { %2570 = vpow2.f32 %v887_v29  ;;  %v826_v4 = vsub.f32 %v3306_v45, %v794_v23  ;;  %v2291_v45 = vpop.f32.mrf.mxu0  ;;  %v2300_v12 = vpop.f32.mrf.mxu1 }
 0x1d2   : > { %v3438_v9 = vpop.eup %2558  ;;  %2572 = vpow2.f32 %v885_v22 }
 0x1d3   : > { %3969 = vst [vmem:[#allocation20_spill] sm:$0xff] %v3438_v9  ;;  %v3440_v43 = vpop.eup %2560  ;;  %v889_v46 = vmul.f32 1.442695, %v826_v4  ;;  %v1176_v50 = vpop.f32.mrf.mxu0 }
 0x1d4   : > { %3970 = vst [vmem:[#allocation21_spill] sm:$0xff] %v3440_v43  ;;  %939 = vadd.xlane.f32.xlu0 %v3440_v43  ;;  %937 = vadd.xlane.f32.xlu1 %v3438_v9  ;;  %v1211_v13 = vpop.f32.mrf.mxu1 }
 0x1d5   : > { %2574 = vpow2.f32 %v889_v46  ;;  %v2292_v35 = vpop.f32.mrf.mxu0 }
 0x1d6   : > { %v3444_v47 = vpop.eup %2562  ;;  %v2303_v3 = vpop.f32.mrf.mxu1 }
 0x1d7   : > { %3971 = vst [vmem:[#allocation22_spill] sm:$0xff] %v3444_v47  ;;  %v3446_v31 = vpop.eup %2564  ;;  %v1179_v20 = vpop.f32.mrf.mxu0 }
 0x1d8   : > { %3972 = vst [vmem:[#allocation23_spill] sm:$0xff] %v3446_v31  ;;  %943 = vadd.xlane.f32.xlu0 %v3444_v47  ;;  %941 = vadd.xlane.f32.xlu1 %v3446_v31  ;;  %v1224_v22 = vpop.f32.mrf.mxu1 }
 0x1d9   : > { %v2327_v56 = vpop.f32.mrf.mxu0 }
 0x1da   : > { %v3450_v36 = vpop.eup %2566  ;;  %v2304_v4 = vpop.f32.mrf.mxu1 }
 0x1db   : > { %3973 = vst [vmem:[#allocation24_spill] sm:$0xff] %v3450_v36  ;;  %v3452_v49 = vpop.eup %2568  ;;  %v1349_v57 = vpop.f32.mrf.mxu0 }
 0x1dc   : > { %3974 = vst [vmem:[#allocation25_spill] sm:$0xff] %v3452_v49  ;;  %947 = vadd.xlane.f32.xlu0 %v3452_v49  ;;  %945 = vadd.xlane.f32.xlu1 %v3450_v36 }
 0x1dd   : > { %v2328_v58 = vpop.f32.mrf.mxu0 }
 0x1de   : > { %v3456_v52 = vpop.eup %2570 }
 0x1df   : > { %3975 = vst [vmem:[#allocation26_spill] sm:$0xff] %v3456_v52  ;;  %v3458_v14 = vpop.eup %2572  ;;  %v1352_v37 = vpop.f32.mrf.mxu0 }
 0x1e0   : > { %3976 = vst [vmem:[#allocation27_spill] sm:$0xff] %v3458_v14  ;;  %951 = vadd.xlane.f32.xlu0 %v3456_v52  ;;  %949 = vadd.xlane.f32.xlu1 %v3458_v14  ;;  %v1227_v52 = vpop.f32.mrf.mxu1 }
 0x1e1   : > { %v2331_v60 = vpop.f32.mrf.mxu0 }
 0x1e2   : > { %v3462_v38 = vpop.eup %2574  ;;  %v2307_v19 = vpop.f32.mrf.mxu1 }
 0x1e3   : > { %3977 = vst [vmem:[#allocation28_spill] sm:$0xff] %v3462_v38  ;;  %v1365_v17 = vpop.f32.mrf.mxu0 }
 0x1e4   : > { %953 = vadd.xlane.f32.xlu1 %v3462_v38  ;;  %v3470_v38 = vld [vmem:[%s3931_s6] ss:$0 sm:$0xff] }
 0x1e5   : > { %v2332_v39 = vpop.f32.mrf.mxu0  ;;  %v1185_v14 = vadd.f32 %v2291_v45, %v3470_v38  ;;  %v1177_v49 = vadd.f32 %v3470_v38, %v1176_v50  ;;  %v1188_v31 = vadd.f32 %v2292_v35, %v3470_v38  ;;  %v1180_v47 = vadd.f32 %v3470_v38, %v1179_v20  ;;  %v1240_v35 = vpop.f32.mrf.mxu1 }
 0x1e6   : > { %v1193_v43 = vadd.f32 %v3470_v38, %v1192_v40  ;;  %v1201_v2 = vadd.f32 %v2295_v26, %v3470_v38  ;;  %v1204_v45 = vadd.f32 %v2296_v63, %v3470_v38  ;;  %v1196_v50 = vadd.f32 %v3470_v38, %v1195_v0 }
 0x1e7   : > { %v1368_v8 = vpop.f32.mrf.mxu0  ;;  %v1358_v9 = vadd.f32 %v2327_v56, %v1185_v14  ;;  %v1350_v10 = vadd.f32 %v1349_v57, %v1177_v49  ;;  %v1361_v62 = vadd.f32 %v2328_v58, %v1188_v31  ;;  %v1353_v61 = vadd.f32 %v1352_v37, %v1180_v47  ;;  %v2308_v57 = vpop.f32.mrf.mxu1 }
 0x1e8   : > { %v1366_v54 = vadd.f32 %v1365_v17, %v1193_v43  ;;  %v1374_v14 = vadd.f32 %v2331_v60, %v1201_v2  ;;  %v1209_v20 = vadd.f32 %v3470_v38, %v1208_v1  ;;  %v1377_v56 = vadd.f32 %v2332_v39, %v1204_v45 }
 0x1e9   : > { %v2335_v27 = vpop.f32.mrf.mxu0  ;;  %2576 = vtanh.f32 %v1358_v9  ;;  %v1217_v49 = vadd.f32 %v2299_v42, %v3470_v38  ;;  %v1369_v31 = vadd.f32 %v1368_v8, %v1196_v50  ;;  %v1220_v9 = vadd.f32 %v2300_v12, %v3470_v38 }
 0x1ea   : > { %2578 = vtanh.f32 %v1350_v10  ;;  %v1212_v2 = vadd.f32 %v3470_v38, %v1211_v13  ;;  %v1225_v63 = vadd.f32 %v3470_v38, %v1224_v22  ;;  %v1236_v8 = vadd.f32 %v2304_v4, %v3470_v38 }
 0x1eb   : > { %v1381_v41 = vpop.f32.mrf.mxu0  ;;  %2580 = vtanh.f32 %v1361_v62  ;;  %v1390_v10 = vadd.f32 %v2335_v27, %v1217_v49  ;;  %v1243_v62 = vpop.f32.mrf.mxu1  ;;  %v1228_v13 = vadd.f32 %v3470_v38, %v1227_v52  ;;  %v1252_v49 = vadd.f32 %v2308_v57, %v3470_v38 }
 0x1ec   : > { %2582 = vtanh.f32 %v1353_v61  ;;  %v1382_v43 = vadd.f32 %v1381_v41, %v1209_v20 }
 0x1ed   : > { %v2336_v44 = vpop.f32.mrf.mxu0  ;;  %2584 = vtanh.f32 %v1366_v54  ;;  %v1233_v54 = vadd.f32 %v2303_v3, %v3470_v38  ;;  %v3494_v17 = vpop.f32.mrf.mxu1  ;;  %v1249_v3 = vadd.f32 %v2307_v19, %v3470_v38 }
 0x1ee   : > { %2586 = vtanh.f32 %v1374_v14  ;;  %v1393_v61 = vadd.f32 %v2336_v44, %v1220_v9  ;;  %v1241_v14 = vadd.f32 %v3470_v38, %v1240_v35 }
 0x1ef   : > { %v1384_v29 = vpop.f32.mrf.mxu0  ;;  %2588 = vtanh.f32 %v1377_v56  ;;  %v1256_v22 = vpop.f32.mrf.mxu1 }
 0x1f0   : > { %v1385_v60 = vadd.f32 %v1384_v29, %v1212_v2 }
 0x1f1   : > { %v2339_v23 = vpop.f32.mrf.mxu0  ;;  %v2312_v9 = vpop.f32.mrf.mxu1 }
 0x1f2   : > { %v1406_v42 = vadd.f32 %v2339_v23, %v1233_v54 }
 0x1f3   : > { %v3465_v46 = vpop.f32.mrf.mxu0 }
 0x1f4   : > { %v1398_v41 = vadd.f32 %v3465_v46, %v1225_v63 }
 0x1f5   : > { %v3473_v36 = vpop.f32.mrf.mxu0 }
 0x1f6   : > { %v3496_v39 = vpop.eup %2576  ;;  %v1409_v45 = vadd.f32 %v3473_v36, %v1236_v8 }
 0x1f7   : > { %v3479_v18 = vpop.f32.mrf.mxu0  ;;  %v2579_v1 = vpop.eup %2578 }
 0x1f8   : > { %v3501_v44 = vpop.eup %2580  ;;  %v1401_v52 = vadd.f32 %v3479_v18, %v1228_v13  ;;  %v1508_v54 = vsub.f32 %v2579_v1, %v3136_v25 }
 0x1f9   : > { %v3484_v55 = vpop.f32.mrf.mxu0  ;;  %v3504_v29 = vpop.eup %2582  ;;  %v1511_v25 = vsub.f32 %v3501_v44, %v3149_v33  ;;  %v2705_v44 = vld [vmem:[%s3016_s23 + $0x8] sm:$0xff] }
 0x1fa   : > { %v3508_v4 = vpop.eup %2584  ;;  %v1422_v56 = vadd.f32 %v3484_v55, %v1249_v3  ;;  %v2704_v3 = vld [vmem:[%s3016_s23] sm:$0xff] }
 0x1fb   : > { %v3488_v47 = vpop.f32.mrf.mxu0  ;;  %v3511_v50 = vpop.eup %2586 }
 0x1fc   : > { %v3515_v19 = vpop.eup %2588  ;;  %v1414_v35 = vadd.f32 %v3488_v47, %v1241_v14 }
 0x1fd   : > { %v2344_v26 = vpop.f32.mrf.mxu0 }
 0x1ff   : > { %v1416_v0 = vpop.f32.mrf.mxu0 }
 0x201   : > { %v3506_v23 = vpop.f32.mrf.mxu0 }
 0x203   : > { %v3519_v36 = vpop.f32.mrf.mxu0 }
 0x205   : > { %v3533_v63 = vpop.f32.mrf.mxu0 }
 0x207   : > { %v3555_v14 = vpop.f32.mrf.mxu0 }
 0x22c   : > { %v892_v58 = vpop.xlane.xlu0 %891 }
 0x22d   : > { %2590 = vrcp.f32 %v892_v58 }
 0x22e   : > { %2592 = vtanh.f32 %v1369_v31 }
 0x22f   : > { %2594 = vtanh.f32 %v1382_v43 }
 0x230   : > { %v896_v37 = vpop.xlane.xlu0 %895  ;;  %v894_v40 = vpop.xlane.xlu1 %893  ;;  %2596 = vtanh.f32 %v1390_v10  ;;  %v1244_v10 = vadd.f32 %v3470_v38, %v1243_v62  ;;  %v1510_v62 = vsub.f32 %v3496_v39, %v3146_v32  ;;  %v1257_v39 = vadd.f32 %v3470_v38, %v1256_v22 }
 0x231   : > { %2598 = vrcp.f32 %v896_v37  ;;  %v1425_v37 = vadd.f32 %v2344_v26, %v1252_v49 }
 0x232   : > { %2600 = vrcp.f32 %v894_v40  ;;  %v1417_v26 = vadd.f32 %v1416_v0, %v1244_v10  ;;  %v1509_v0 = vsub.f32 %v3504_v29, %v2705_v44 }
 0x233   : > { %2602 = vtanh.f32 %v1393_v61 }
 0x234   : > { %v900_v27 = vpop.xlane.xlu0 %899  ;;  %v898_v12 = vpop.xlane.xlu1 %897  ;;  %2604 = vtanh.f32 %v1385_v60 }
 0x235   : > { %2606 = vrcp.f32 %v900_v27  ;;  %v3531_v60 = vpop.f32.mrf.mxu1 }
 0x236   : > { %2608 = vrcp.f32 %v898_v12 }
 0x237   : > { %2610 = vtanh.f32 %v1406_v42 }
 0x238   : > { %v904_v46 = vpop.xlane.xlu0 %903  ;;  %2612 = vtanh.f32 %v1398_v41 }
 0x239   : > { %2614 = vrcp.f32 %v904_v46  ;;  %v902_v20 = vpop.xlane.xlu1 %901  ;;  %v2706_v46 = vld [vmem:[%s3016_s23 + $0x20] sm:$0xff] }
 0x23a   : > { %v2591_v31 = vpop.eup %2590  ;;  %2616 = vrcp.f32 %v902_v20 }
 0x23b   : > { %v3521_v43 = vpop.eup %2592  ;;  %v987_v58 = vmul.f32 32.0, %v2591_v31  ;;  %2618 = vtanh.f32 %v1409_v45 }
 0x23c   : > { %v3523_v18 = vpop.eup %2594  ;;  %2620 = vtanh.f32 %v1401_v52  ;;  %v3553_v52 = vpop.f32.mrf.mxu1 }
 0x23d   : > { %v3527_v2 = vpop.eup %2596  ;;  %v1019_v55 = vmul.f32 %v3334_v21, %v987_v58  ;;  %v908_v57 = vpop.xlane.xlu0 %907  ;;  %2622 = vtanh.f32 %v1422_v56  ;;  %v1265_v58 = vadd.f32 %v3494_v17, %v3470_v38 }
 0x23e   : > { %v906_v61 = vpop.xlane.xlu1 %905  ;;  %v2599_v40 = vpop.eup %2598  ;;  %2624 = vrcp.f32 %v908_v57 }
 0x23f   : > { %v2601_v47 = vpop.eup %2600  ;;  %v989_v42 = vmul.f32 32.0, %v2599_v40  ;;  %2626 = vrcp.f32 %v906_v61  ;;  %v1540_v21 = vmul.f32 %v1508_v54, %v1019_v55  ;;  %v2708_v55 = vld [vmem:[%s3016_s23 + $0x10] sm:$0xff] }
 0x240   : > { %v3537_v8 = vpop.eup %2602  ;;  %v988_v27 = vmul.f32 32.0, %v2601_v47  ;;  %2628 = vtanh.f32 %v1414_v35  ;;  %v1268_v35 = vadd.f32 %v2312_v9, %v3470_v38  ;;  %v3581_v9 = vld [vmem:[%s3016_s23 + $0x38] sm:$0xff] }
 0x241   : > { %v3541_v1 = vpop.eup %2604  ;;  %v1021_v12 = vmul.f32 %v3337_v24, %v989_v42  ;;  %v912_v41 = vpop.xlane.xlu0 %911  ;;  %v3545_v32 = vadd.f32 %v2704_v3, %v1540_v21  ;;  %2630 = vtanh.f32 %v1425_v37  ;;  %v1512_v24 = vsub.f32 %v3508_v4, %v2706_v46 }
 0x242   : > { %v910_v13 = vpop.xlane.xlu1 %909  ;;  %v2607_v45 = vpop.eup %2606  ;;  %v1020_v33 = vmul.f32 %v3341_v48, %v988_v27  ;;  %2632 = vrcp.f32 %v912_v41  ;;  %v3563_v48 = vld [vmem:[%s3016_s23 + $0x30] sm:$0xff]  ;;  %v1430_v37 = vadd.f32 %v3519_v36, %v1257_v39  ;;  %v1515_v42 = vsub.f32 %v3515_v19, %v3581_v9 }
 0x243   : > { %v2609_v20 = vpop.eup %2608  ;;  %v1542_v56 = vmul.f32 %v1510_v62, %v1021_v12  ;;  %v991_v49 = vmul.f32 32.0, %v2607_v45  ;;  %2634 = vrcp.f32 %v910_v13  ;;  %1604 = vst [vmem:[%s3558_s12] sm:$0xff] %v3545_v32  ;;  %v1514_v29 = vsub.f32 %v3511_v50, %v3563_v48  ;;  %v3585_v62 = vpop.f32.mrf.mxu1 }
 0x244   : > { %v3567_v22 = vpop.eup %2610  ;;  %v990_v4 = vmul.f32 32.0, %v2609_v20  ;;  %v1541_v31 = vmul.f32 %v1509_v0, %v1020_v33  ;;  %2636 = vtanh.f32 %v1417_v26  ;;  %v3587_v21 = vpop.f32.mrf.mxu0  ;;  %v1438_v3 = vadd.f32 %v3506_v23, %v1265_v58  ;;  %v3619_v58 = vld [vmem:[%s3016_s23 + $0x50] sm:$0xff] }
 0x245   : > { %v3572_v10 = vpop.eup %2612  ;;  %v3575_v57 = vadd.f32 %v2708_v55, %v1542_v56  ;;  %v1023_v61 = vmul.f32 %v3349_v53, %v991_v49  ;;  %v916_v54 = vpop.xlane.xlu0 %915 }
 0x246   : > { %v914_v50 = vpop.xlane.xlu1 %913  ;;  %v2615_v40 = vpop.eup %2614  ;;  %v1022_v47 = vmul.f32 %v3345_v51, %v990_v4  ;;  %2638 = vrcp.f32 %v916_v54  ;;  %v1573_v17 = vadd.f32 %v2705_v44, %v1541_v31  ;;  %v1260_v51 = vadd.f32 %v3470_v38, %v3531_v60  ;;  %v2712_v4 = vld [vmem:[%s3016_s23 + $0x40] sm:$0xff] }
 0x247   : > { %v2617_v53 = vpop.eup %2616  ;;  %1606 = vst [vmem:[%s3558_s12 + $0x10] sm:$0xff] %v3575_v57  ;;  %v993_v27 = vmul.f32 32.0, %v2615_v40  ;;  %2640 = vrcp.f32 %v914_v50  ;;  %v1544_v36 = vmul.f32 %v1512_v24, %v1023_v61  ;;  %v1441_v60 = vadd.f32 %v3533_v63, %v1268_v35  ;;  %v2710_v24 = vld [vmem:[%s3016_s23 + $0x18] sm:$0xff]  ;;  %v3610_v56 = vpop.f32.mrf.mxu1 }
 0x248   : > { %v3593_v26 = vpop.eup %2618  ;;  %v1543_v12 = vmul.f32 %v1511_v25, %v1022_v47  ;;  %v992_v41 = vmul.f32 32.0, %v2617_v53  ;;  %1605 = vst [vmem:[%s3558_s12 + $0x8] sm:$0xff] %v1573_v17  ;;  %v1636_v13 = vpack.c.bf16 %v1573_v17, %v3545_v32  ;;  %2642 = vtanh.f32 %v1430_v37 }
 0x249   : > { %v3598_v39 = vpop.eup %2620  ;;  %v1025_v45 = vmul.f32 %v3355_v59, %v993_v27  ;;  %v920_v33 = vpop.xlane.xlu0 %919  ;;  %v3601_v0 = vadd.f32 %v2706_v46, %v1544_v36  ;;  %v2711_v59 = vld [vmem:[%s3016_s23 + $0x28] sm:$0xff]  ;;  %v1516_v31 = vsub.f32 %v3523_v18, %v2712_v4  ;;  %v1433_v18 = vadd.f32 %v3555_v14, %v1260_v51  ;;  %v3637_v27 = vld [vmem:[%s3016_s23 + $0x58] sm:$0xff] }
 0x24a   : > { %v918_v44 = vpop.xlane.xlu1 %917  ;;  %v3604_v25 = vpop.eup %2622  ;;  %v1575_v32 = vadd.f32 %v2710_v24, %v1543_v12  ;;  %v1024_v23 = vmul.f32 %v3357_v16, %v992_v41  ;;  %2644 = vrcp.f32 %v920_v33  ;;  %2373 = vmatprep.mubr.bf16.mxu1 %v1636_v13  ;;  %v1513_v20 = vsub.f32 %v3521_v43, %v2711_v59  ;;  %v2715_v51 = vld [vmem:[%s3016_s23 + $0x48] sm:$0xff]  ;;  %v3647_v12 = vld [vmem:[%s3016_s23 + $0x70] sm:$0xff] }
 0x24b   : > { %v3612_v46 = vpop.f32.mrf.mxu0  ;;  %v2625_v49 = vpop.eup %2624  ;;  %2646 = vrcp.f32 %v918_v44  ;;  %1608 = vst [vmem:[%s3558_s12 + $0x20] sm:$0xff] %v3601_v0  ;;  %v1546_v63 = vmul.f32 %v1514_v29, %v1025_v45  ;;  %v1518_v16 = vsub.f32 %v3527_v2, %v3619_v58  ;;  %v1519_v14 = vsub.f32 %v3537_v8, %v3637_v27 }
 0x24c   : > { %v2627_v35 = vpop.eup %2626  ;;  %1607 = vst [vmem:[%s3558_s12 + $0x18] sm:$0xff] %v1575_v32  ;;  %v995_v43 = vmul.f32 32.0, %v2625_v49  ;;  %v1637_v55 = vpack.c.bf16 %v1575_v32, %v3575_v57  ;;  %2648 = vtanh.f32 %v1438_v3  ;;  %v1545_v61 = vmul.f32 %v1513_v20, %v1024_v23  ;;  %v1275_v17 = vpop.f32.mrf.mxu1  ;;  %v2717_v49 = vld [vmem:[%s3016_s23 + $0x60] sm:$0xff] }
 0x24d   : > { %v3625_v54 = vpop.eup %2628  ;;  %v994_v50 = vmul.f32 32.0, %v2627_v35  ;;  %v924_v29 = vpop.xlane.xlu0 %923  ;;  %2650 = vtanh.f32 %v1441_v60  ;;  %v3629_v2 = vadd.f32 %v3563_v48, %v1546_v63  ;;  %v1522_v41 = vsub.f32 %v3567_v22, %v3647_v12 }
 0x24e   : > { %v922_v37 = vpop.xlane.xlu1 %921  ;;  %v3631_v40 = vpop.eup %2630  ;;  %v1027_v57 = vmul.f32 %v3365_v28, %v995_v43  ;;  %2652 = vrcp.f32 %v924_v29  ;;  %2374 = vmatmul.mubr.bf16.vlgmr.msra.gmra.mxu1 %v1637_v55  ;;  %v1577_v47 = vadd.f32 %v2711_v59, %v1545_v61  ;;  %v1517_v28 = vsub.f32 %v3541_v1, %v2715_v51 }
 0x24f   : > { %v3634_v53 = vpop.f32.mrf.mxu0  ;;  %v2633_v36 = vpop.eup %2632  ;;  %v1026_v48 = vmul.f32 %v3363_v7, %v994_v50  ;;  %2654 = vrcp.f32 %v922_v37  ;;  %1610 = vst [vmem:[%s3558_s12 + $0x30] sm:$0xff] %v3629_v2  ;;  %v1273_v7 = vadd.f32 %v3470_v38, %v3585_v62  ;;  %v1281_v1 = vadd.f32 %v3553_v52, %v3470_v38 }
 0x250   : > { %v2635_v13 = vpop.eup %2634  ;;  %v997_v3 = vmul.f32 32.0, %v2633_v36  ;;  %1609 = vst [vmem:[%s3558_s12 + $0x28] sm:$0xff] %v1577_v47  ;;  %v1638_v45 = vpack.c.bf16 %v1577_v47, %v3601_v0  ;;  %v1548_v33 = vmul.f32 %v1516_v31, %v1027_v57  ;;  %2656 = vtanh.f32 %v1433_v18  ;;  %v3663_v59 = vpop.f32.mrf.mxu1  ;;  %v3686_v57 = vld [vmem:[%s3016_s23 + $0x78] sm:$0xff] }
 0x251   : > { %v996_v44 = vmul.f32 32.0, %v2635_v13  ;;  %v928_v60 = vpop.xlane.xlu0 %927  ;;  %v1547_v32 = vmul.f32 %v1515_v42, %v1026_v48  ;;  %v3660_v23 = vpop.eup %2636  ;;  %v1520_v52 = vsub.f32 %v3572_v10, %v2717_v49  ;;  %v1276_v43 = vadd.f32 %v3470_v38, %v1275_v17 }
 0x252   : > { %v926_v24 = vpop.xlane.xlu1 %925  ;;  %v1029_v0 = vmul.f32 %v3371_v11, %v997_v3  ;;  %2658 = vrcp.f32 %v928_v60  ;;  %2377 = vmatprep.mubr.bf16.mxu1 %v1638_v45  ;;  %v1580_v62 = vadd.f32 %v2712_v4, %v1548_v33  ;;  %v1448_v20 = vpop.f32.mrf.mxu0  ;;  %v1284_v11 = vadd.f32 %v3610_v56, %v3470_v38 }
 0x253   : > { %v2639_v63 = vpop.eup %2638  ;;  %v1028_v31 = vmul.f32 %v3373_v30, %v996_v44  ;;  %2660 = vrcp.f32 %v926_v24  ;;  %v1579_v19 = vadd.f32 %v3581_v9, %v1547_v32  ;;  %v1446_v4 = vadd.f32 %v3612_v46, %v1273_v7  ;;  %v1288_v18 = vpop.f32.mrf.mxu1  ;;  %v2719_v24 = vld [vmem:[%s3016_s23 + $0x68] sm:$0xff] }
 0x254   : > { %v2641_v42 = vpop.eup %2640  ;;  %v999_v35 = vmul.f32 32.0, %v2639_v63  ;;  %1612 = vst [vmem:[%s3558_s12 + $0x40] sm:$0xff] %v1580_v62  ;;  %v1550_v55 = vmul.f32 %v1518_v16, %v1029_v0  ;;  %v1454_v9 = vadd.f32 %v3587_v21, %v1281_v1  ;;  %v3683_v16 = vpop.f32.mrf.mxu0  ;;  %v1457_v17 = vadd.f32 %v3634_v53, %v1284_v11  ;;  %v3978_v11 = vld [vmem:[#allocation13_spill] sm:$0xff] }
 0x255   : > { %v998_v61 = vmul.f32 32.0, %v2641_v42  ;;  %v932_v10 = vpop.xlane.xlu0 %931  ;;  %1611 = vst [vmem:[%s3558_s12 + $0x38] sm:$0xff] %v1579_v19  ;;  %v1639_v30 = vpack.c.bf16 %v1579_v19, %v3629_v2  ;;  %v1549_v29 = vmul.f32 %v1517_v28, %v1028_v31  ;;  %v3677_v37 = vpop.eup %2642  ;;  %v1523_v2 = vsub.f32 %v3593_v26, %v3686_v57 }
 0x256   : > { %v930_v50 = vpop.xlane.xlu1 %929  ;;  %v1031_v56 = vmul.f32 %v3381_v34, %v999_v35  ;;  %2662 = vrcp.f32 %v932_v10  ;;  %v3681_v46 = vadd.f32 %v3619_v58, %v1550_v55  ;;  %v1449_v48 = vadd.f32 %v1448_v20, %v1276_v43  ;;  %v2320_v44 = vpop.f32.mrf.mxu1 }
 0x257   : > { %v2645_v47 = vpop.eup %2644  ;;  %v1030_v21 = vmul.f32 %v3379_v5, %v998_v61  ;;  %2664 = vrcp.f32 %v930_v50  ;;  %2378 = vmatmul.mubr.bf16.gmra.mxu1 %v1639_v30  ;;  %v1581_v34 = vadd.f32 %v2715_v51, %v1549_v29  ;;  %v1461_v60 = vpop.f32.mrf.mxu0  ;;  %v1521_v1 = vsub.f32 %v3598_v39, %v2719_v24  ;;  %v3979_v61 = vld [vmem:[#allocation12_spill] sm:$0xff]  ;;  %v2722_v30 = vld [vmem:[%s3016_s23 + $0x88] sm:$0xff] }
 0x258   : > { %v2647_v36 = vpop.eup %2646  ;;  %v1001_v58 = vmul.f32 32.0, %v2645_v47  ;;  %2666 = vtanh.f32 %v1446_v4  ;;  %1614 = vst [vmem:[%s3558_s12 + $0x50] sm:$0xff] %v3681_v46  ;;  %v1552_v28 = vmul.f32 %v1520_v52, %v1031_v56  ;;  %v1289_v63 = vadd.f32 %v3470_v38, %v1288_v18  ;;  %v1291_v35 = vpop.f32.mrf.mxu1 }
 0x259   : > { %v3694_v13 = vpop.eup %2648  ;;  %v1000_v3 = vmul.f32 32.0, %v2647_v36  ;;  %2668 = vtanh.f32 %v1454_v9  ;;  %v936_v45 = vpop.xlane.xlu0 %935  ;;  %1613 = vst [vmem:[%s3558_s12 + $0x48] sm:$0xff] %v1581_v34  ;;  %v1640_v7 = vpack.c.bf16 %v1581_v34, %v1580_v62  ;;  %v1551_v53 = vmul.f32 %v1519_v14, %v1030_v21  ;;  %v2720_v14 = vld [vmem:[%s3016_s23 + $0x80] sm:$0xff]  ;;  %v3980_v36 = vld [vmem:[#allocation14_spill] sm:$0xff] }
 0x25a   : > { %v934_v5 = vpop.xlane.xlu1 %933  ;;  %v3700_v51 = vpop.eup %2650  ;;  %v1033_v33 = vmul.f32 %v3390_v6, %v1001_v58  ;;  %2670 = vrcp.f32 %v936_v45  ;;  %v1584_v32 = vadd.f32 %v2717_v49, %v1552_v28  ;;  %v1524_v62 = vsub.f32 %v3625_v54, %v2720_v14  ;;  %v3981_v45 = vld [vmem:[#allocation15_spill] sm:$0xff] }
 0x25b   : > { %v2653_v0 = vpop.eup %2652  ;;  %v1032_v20 = vmul.f32 %v3392_v15, %v1000_v3  ;;  %2672 = vrcp.f32 %v934_v5  ;;  %2381 = vmatprep.mubr.bf16.mxu1 %v1640_v7  ;;  %v1583_v8 = vadd.f32 %v3637_v27, %v1551_v53  ;;  %v3719_v4 = vpop.f32.mrf.mxu0  ;;  %v1525_v9 = vsub.f32 %v3660_v23, %v2722_v30  ;;  %v2723_v53 = vld [vmem:[%s3016_s23 + $0xa0] sm:$0xff] }
 0x25c   : > { %v2655_v6 = vpop.eup %2654  ;;  %v1003_v52 = vmul.f32 32.0, %v2653_v0  ;;  %2674 = vtanh.f32 %v1457_v17  ;;  %1616 = vst [vmem:[%s3558_s12 + $0x60] sm:$0xff] %v1584_v32  ;;  %v1554_v39 = vmul.f32 %v1522_v41, %v1033_v33  ;;  %v2721_v41 = vld [vmem:[%s3016_s23 + $0x90] sm:$0xff]  ;;  %v1462_v18 = vadd.f32 %v1461_v60, %v1289_v63 }
 0x25d   : > { %v1002_v15 = vmul.f32 32.0, %v2655_v6  ;;  %v940_v49 = vpop.xlane.xlu0 %939  ;;  %2676 = vtanh.f32 %v1449_v48  ;;  %1615 = vst [vmem:[%s3558_s12 + $0x58] sm:$0xff] %v1583_v8  ;;  %v1641_v27 = vpack.c.bf16 %v1583_v8, %v3681_v46  ;;  %v1553_v54 = vmul.f32 %v1521_v1, %v1032_v20  ;;  %v3716_v19 = vpop.eup %2656  ;;  %v3983_v6 = vld [vmem:[#allocation16_spill] sm:$0xff] }
 0x25e   : > { %v938_v31 = vpop.xlane.xlu1 %937  ;;  %v1035_v42 = vmul.f32 %v3978_v11, %v1003_v52  ;;  %2678 = vrcp.f32 %v940_v49  ;;  %v1586_v22 = vadd.f32 %v3647_v12, %v1554_v39  ;;  %v1526_v43 = vsub.f32 %v3604_v25, %v2721_v41  ;;  %v1464_v48 = vpop.f32.mrf.mxu0  ;;  %v2724_v39 = vld [vmem:[%s3016_s23 + $0x98] sm:$0xff] }
 0x25f   : > { %v2659_v55 = vpop.eup %2658  ;;  %v1034_v10 = vmul.f32 %v3979_v61, %v1002_v15  ;;  %2680 = vrcp.f32 %v938_v31  ;;  %2382 = vmatmul.mubr.bf16.gmra.mxu1 %v1641_v27  ;;  %v1585_v50 = vadd.f32 %v2719_v24, %v1553_v54  ;;  %v1297_v46 = vadd.f32 %v3663_v59, %v3470_v38 }
 0x260   : > { %v2661_v29 = vpop.eup %2660  ;;  %v1005_v56 = vmul.f32 32.0, %v2659_v55  ;;  %1618 = vst [vmem:[%s3558_s12 + $0x70] sm:$0xff] %v1586_v22  ;;  %v1556_v12 = vmul.f32 %v1524_v62, %v1035_v42  ;;  %v1292_v17 = vadd.f32 %v3470_v38, %v1291_v35  ;;  %v1300_v59 = vadd.f32 %v2320_v44, %v3470_v38  ;;  %v3984_v55 = vld [vmem:[#allocation18_spill] sm:$0xff] }
 0x261   : > { %v1004_v47 = vmul.f32 32.0, %v2661_v29  ;;  %v944_v25 = vpop.xlane.xlu0 %943  ;;  %1617 = vst [vmem:[%s3558_s12 + $0x68] sm:$0xff] %v1585_v50  ;;  %v1642_v34 = vpack.c.bf16 %v1585_v50, %v1584_v32  ;;  %v1555_v23 = vmul.f32 %v1523_v2, %v1034_v10  ;;  %v1528_v26 = vsub.f32 %v3677_v37, %v2723_v53  ;;  %v3982_v37 = vld [vmem:[#allocation17_spill] sm:$0xff]  ;;  %v2725_v10 = vld [vmem:[%s3016_s23 + $0xb0] sm:$0xff] }
 0x262   : > { %v942_v21 = vpop.xlane.xlu1 %941  ;;  %v1037_v58 = vmul.f32 %v3980_v36, %v1005_v56  ;;  %2682 = vrcp.f32 %v944_v25  ;;  %v1588_v28 = vadd.f32 %v2720_v14, %v1556_v12  ;;  %v1470_v60 = vadd.f32 %v3683_v16, %v1297_v46  ;;  %v2726_v46 = vld [vmem:[%s3016_s23 + $0xa8] sm:$0xff] }
 0x263   : > { %v2663_v3 = vpop.eup %2662  ;;  %v1036_v5 = vmul.f32 %v3981_v45, %v1004_v47  ;;  %2684 = vrcp.f32 %v942_v21  ;;  %2385 = vmatprep.mubr.bf16.mxu1 %v1642_v34  ;;  %v1587_v7 = vadd.f32 %v3686_v57, %v1555_v23  ;;  %v1465_v0 = vadd.f32 %v1464_v48, %v1292_v17  ;;  %v2727_v21 = vld [vmem:[%s3016_s23 + $0xc0] sm:$0xff] }
 0x264   : > { %v2665_v2 = vpop.eup %2664  ;;  %v1007_v33 = vmul.f32 32.0, %v2663_v3  ;;  %2686 = vtanh.f32 %v1462_v18  ;;  %1620 = vst [vmem:[%s3558_s12 + $0x80] sm:$0xff] %v1588_v28  ;;  %v1558_v38 = vmul.f32 %v1526_v43, %v1037_v58  ;;  %v1527_v15 = vsub.f32 %v3631_v40, %v2724_v39  ;;  %v3986_v58 = vld [vmem:[#allocation21_spill] sm:$0xff] }
 0x265   : > { %v3743_v44 = vpop.eup %2666  ;;  %v1006_v24 = vmul.f32 32.0, %v2665_v2  ;;  %v948_v1 = vpop.xlane.xlu0 %947  ;;  %1619 = vst [vmem:[%s3558_s12 + $0x78] sm:$0xff] %v1587_v7  ;;  %v1643_v20 = vpack.c.bf16 %v1587_v7, %v1586_v22  ;;  %v1557_v57 = vmul.f32 %v1525_v9, %v1036_v5  ;;  %v1473_v27 = vadd.f32 %v3719_v4, %v1300_v59  ;;  %v3985_v9 = vld [vmem:[#allocation19_spill] sm:$0xff] }
 0x266   : > { %v946_v32 = vpop.xlane.xlu1 %945  ;;  %v3746_v8 = vpop.eup %2668  ;;  %v1039_v14 = vmul.f32 %v3982_v37, %v1007_v33  ;;  %2688 = vrcp.f32 %v948_v1  ;;  %v1590_v16 = vadd.f32 %v2721_v41, %v1558_v38  ;;  %v1530_v50 = vsub.f32 %v3694_v13, %v2725_v10  ;;  %v2728_v5 = vld [vmem:[%s3016_s23 + $0xb8] sm:$0xff] }
 0x267   : > { %v2671_v62 = vpop.eup %2670  ;;  %v1038_v52 = vmul.f32 %v3983_v6, %v1006_v24  ;;  %2690 = vrcp.f32 %v946_v32  ;;  %2386 = vmatmul.mubr.bf16.gmra.mxu1 %v1643_v20  ;;  %v1589_v63 = vadd.f32 %v2722_v30, %v1557_v57  ;;  %v1529_v18 = vsub.f32 %v3716_v19, %v2726_v46  ;;  %v3988_v24 = vld [vmem:[#allocation22_spill] sm:$0xff]  ;;  %v3989_v57 = vld [vmem:[#allocation23_spill] sm:$0xff] }
 0x268   : > { %v2673_v49 = vpop.eup %2672  ;;  %v1009_v31 = vmul.f32 32.0, %v2671_v62  ;;  %2692 = vtanh.f32 %v1470_v60  ;;  %1622 = vst [vmem:[%s3558_s12 + $0x90] sm:$0xff] %v1590_v16  ;;  %v1560_v54 = vmul.f32 %v1528_v26, %v1039_v14  ;;  %v1532_v34 = vsub.f32 %v3743_v44, %v2727_v21 }
 0x269   : > { %v3754_v11 = vpop.eup %2674  ;;  %v1008_v42 = vmul.f32 32.0, %v2673_v49  ;;  %2694 = vtanh.f32 %v1465_v0  ;;  %v952_v35 = vpop.xlane.xlu0 %951  ;;  %1621 = vst [vmem:[%s3558_s12 + $0x88] sm:$0xff] %v1589_v63  ;;  %v1644_v41 = vpack.c.bf16 %v1589_v63, %v1588_v28  ;;  %v1559_v43 = vmul.f32 %v1527_v15, %v1038_v52  ;;  %v3987_v28 = vld [vmem:[#allocation20_spill] sm:$0xff]  ;;  %v2729_v0 = vld [vmem:[%s3016_s23 + $0xd0] sm:$0xff] }
 0x26a   : > { %v950_v22 = vpop.xlane.xlu1 %949  ;;  %v3757_v40 = vpop.eup %2676  ;;  %v1041_v61 = vmul.f32 %v3984_v55, %v1009_v31  ;;  %2696 = vrcp.f32 %v952_v35  ;;  %v1592_v4 = vadd.f32 %v2723_v53, %v1560_v54  ;;  %v1531_v7 = vsub.f32 %v3700_v51, %v2728_v5 }
 0x26b   : > { %v2679_v30 = vpop.eup %2678  ;;  %v1040_v29 = vmul.f32 %v3985_v9, %v1008_v42  ;;  %2698 = vrcp.f32 %v950_v22  ;;  %2389 = vmatprep.mubr.bf16.mxu1 %v1644_v41  ;;  %v1591_v56 = vadd.f32 %v2724_v39, %v1559_v43  ;;  %v1534_v20 = vsub.f32 %v3746_v8, %v2729_v0  ;;  %v2731_v39 = vld [vmem:[%s3016_s23 + $0xe0] sm:$0xff]  ;;  %v3990_v42 = vld [vmem:[#allocation25_spill] sm:$0xff] }
 0x26c   : > { %v2681_v12 = vpop.eup %2680  ;;  %v1011_v47 = vmul.f32 32.0, %v2679_v30  ;;  %1624 = vst [vmem:[%s3558_s12 + $0xa0] sm:$0xff] %v1592_v4  ;;  %v1562_v25 = vmul.f32 %v1530_v50, %v1041_v61  ;;  %2700 = vtanh.f32 %v1473_v27  ;;  %v3991_v43 = vld [vmem:[#allocation24_spill] sm:$0xff]  ;;  %v2732_v61 = vld [vmem:[%s3016_s23 + $0xd8] sm:$0xff] }
 0x26d   : > { %v1010_v17 = vmul.f32 32.0, %v2681_v12  ;;  %1623 = vst [vmem:[%s3558_s12 + $0x98] sm:$0xff] %v1591_v56  ;;  %v1645_v23 = vpack.c.bf16 %v1591_v56, %v1590_v16  ;;  %v1561_v36 = vmul.f32 %v1529_v18, %v1040_v29  ;;  %v2730_v16 = vld [vmem:[%s3016_s23 + $0xc8] sm:$0xff]  ;;  %v3992_v18 = vld [vmem:[#allocation26_spill] sm:$0xff] }
 0x26e   : > { %v954_v13 = vpop.xlane.xlu1 %953  ;;  %v1043_v59 = vmul.f32 %v3986_v58, %v1011_v47  ;;  %v1594_v19 = vadd.f32 %v2725_v10, %v1562_v25  ;;  %v1533_v62 = vsub.f32 %v3757_v40, %v2730_v16  ;;  %v2733_v47 = vld [vmem:[%s3016_s23 + $0xf0] sm:$0xff] }
 0x26f   : > { %2702 = vrcp.f32 %v954_v13  ;;  %v2683_v48 = vpop.eup %2682  ;;  %v1042_v3 = vmul.f32 %v3987_v28, %v1010_v17  ;;  %2390 = vmatmul.mubr.bf16.gmra.mxu1 %v1645_v23  ;;  %v1593_v45 = vadd.f32 %v2726_v46, %v1561_v36  ;;  %v2734_v23 = vld [vmem:[%s3016_s23 + $0xe8] sm:$0xff]  ;;  %v3994_v28 = vld [vmem:[#allocation28_spill] sm:$0xff] }
 0x270   : > { %v2685_v53 = vpop.eup %2684  ;;  %v1013_v26 = vmul.f32 32.0, %v2683_v48  ;;  %1626 = vst [vmem:[%s3558_s12 + $0xb0] sm:$0xff] %v1594_v19  ;;  %v1564_v2 = vmul.f32 %v1532_v34, %v1043_v59 }
 0x271   : > { %v2687_v33 = vpop.eup %2686  ;;  %v1012_v60 = vmul.f32 32.0, %v2685_v53  ;;  %1625 = vst [vmem:[%s3558_s12 + $0xa8] sm:$0xff] %v1593_v45  ;;  %v1646_v38 = vpack.c.bf16 %v1593_v45, %v1592_v4  ;;  %v1563_v44 = vmul.f32 %v1531_v7, %v1042_v3  ;;  %v1535_v4 = vsub.f32 %v3754_v11, %v2732_v61  ;;  %v3993_v11 = vld [vmem:[#allocation27_spill] sm:$0xff] }
 0x272   : > { %v1045_v1 = vmul.f32 %v3988_v24, %v1013_v26  ;;  %v1596_v32 = vadd.f32 %v2727_v21, %v1564_v2  ;;  %v1536_v15 = vsub.f32 %v2687_v33, %v2731_v39  ;;  %v2735_v45 = vld [vmem:[%s3016_s23 + $0xf8] sm:$0xff] }
 0x273   : > { %v2689_v51 = vpop.eup %2688  ;;  %v1044_v37 = vmul.f32 %v3989_v57, %v1012_v60  ;;  %2393 = vmatprep.mubr.bf16.mxu1 %v1646_v38  ;;  %v1595_v14 = vadd.f32 %v2728_v5, %v1563_v44 }
 0x274   : > { %v2691_v6 = vpop.eup %2690  ;;  %v1015_v52 = vmul.f32 32.0, %v2689_v51  ;;  %1628 = vst [vmem:[%s3558_s12 + $0xc0] sm:$0xff] %v1596_v32  ;;  %v1566_v63 = vmul.f32 %v1534_v20, %v1045_v1 }
 0x275   : > { %v2693_v49 = vpop.eup %2692  ;;  %v1014_v31 = vmul.f32 32.0, %v2691_v6  ;;  %1627 = vst [vmem:[%s3558_s12 + $0xb8] sm:$0xff] %v1595_v14  ;;  %v1647_v8 = vpack.c.bf16 %v1595_v14, %v1594_v19  ;;  %v1565_v27 = vmul.f32 %v1533_v62, %v1044_v37 }
 0x276   : > { %v2695_v54 = vpop.eup %2694  ;;  %v1047_v35 = vmul.f32 %v3990_v42, %v1015_v52  ;;  %v1598_v22 = vadd.f32 %v2729_v0, %v1566_v63  ;;  %v1538_v25 = vsub.f32 %v2693_v49, %v2733_v47 }
 0x277   : > { %v2697_v41 = vpop.eup %2696  ;;  %v1046_v40 = vmul.f32 %v3991_v43, %v1014_v31  ;;  %2394 = vmatmul.mubr.bf16.gmra.mxu1 %v1647_v8  ;;  %v1597_v55 = vadd.f32 %v2730_v16, %v1565_v27  ;;  %v1537_v36 = vsub.f32 %v2695_v54, %v2734_v23 }
 0x278   : > { %v2699_v10 = vpop.eup %2698  ;;  %v1017_v50 = vmul.f32 32.0, %v2697_v41  ;;  %1630 = vst [vmem:[%s3558_s12 + $0xd0] sm:$0xff] %v1598_v22  ;;  %v1568_v30 = vmul.f32 %v1536_v15, %v1047_v35 }
 0x279   : > { %v1016_v9 = vmul.f32 32.0, %v2699_v10  ;;  %1629 = vst [vmem:[%s3558_s12 + $0xc8] sm:$0xff] %v1597_v55  ;;  %v1648_v29 = vpack.c.bf16 %v1597_v55, %v1596_v32  ;;  %v1567_v56 = vmul.f32 %v1535_v4, %v1046_v40  ;;  %v2701_v46 = vpop.eup %2700 }
 0x27a   : > { %v1049_v12 = vmul.f32 %v3992_v18, %v1017_v50  ;;  %v1600_v21 = vadd.f32 %v2731_v39, %v1568_v30  ;;  %v1539_v5 = vsub.f32 %v2701_v46, %v2735_v45 }
 0x27b   : > { %v1048_v17 = vmul.f32 %v3993_v11, %v1016_v9  ;;  %2397 = vmatprep.mubr.bf16.mxu1 %v1648_v29  ;;  %v1599_v13 = vadd.f32 %v2732_v61, %v1567_v56 }
 0x27c   : > { %v2703_v34 = vpop.eup %2702  ;;  %v1570_v58 = vmul.f32 %v1538_v25, %v1049_v12  ;;  %1632 = vst [vmem:[%s3558_s12 + $0xe0] sm:$0xff] %v1600_v21 }
 0x27d   : > { %v1018_v59 = vmul.f32 32.0, %v2703_v34  ;;  %1631 = vst [vmem:[%s3558_s12 + $0xd8] sm:$0xff] %v1599_v13  ;;  %v1649_v19 = vpack.c.bf16 %v1599_v13, %v1598_v22  ;;  %v1569_v48 = vmul.f32 %v1537_v36, %v1048_v17 }
 0x27e   : > { %v1602_v7 = vadd.f32 %v2733_v47, %v1570_v58 }
 0x27f   : > { %v1050_v3 = vmul.f32 %v3994_v28, %v1018_v59  ;;  %2398 = vmatmul.mubr.bf16.gmra.mxu1 %v1649_v19  ;;  %v1601_v53 = vadd.f32 %v2734_v23, %v1569_v48 }
 0x280   : > { %1634 = vst [vmem:[%s3558_s12 + $0xf0] sm:$0xff] %v1602_v7 }
 0x281   : > { %v1571_v26 = vmul.f32 %v1539_v5, %v1050_v3  ;;  %1633 = vst [vmem:[%s3558_s12 + $0xe8] sm:$0xff] %v1601_v53  ;;  %v1650_v2 = vpack.c.bf16 %v1601_v53, %v1600_v21 }
 0x283   : > { %v1603_v33 = vadd.f32 %v2735_v45, %v1571_v26  ;;  %2401 = vmatprep.mubr.bf16.mxu1 %v1650_v2 }
 0x285   : > { %1635 = vst [vmem:[%s3558_s12 + $0xf8] sm:$0xff] %v1603_v33  ;;  %v1651_v60 = vpack.c.bf16 %v1603_v33, %v1602_v7 }
 0x287   : > { %2402 = vmatmul.mubr.bf16.gmra.mxu1 %v1651_v60 }
 0x288   : > { %2777 = shalt.err (!%p2774_p0)
}
 0x289   : > { %s2778_s10 = scalar_lea.hbm %s3808_s16, 4096  ;;  %s2782_s20 = scalar_lea.hbm %s3932_s7, 8192 }
 0x28a   : > { %p2779_p2 = scmp.ne.s32.totalorder %s3808_s16, %s2778_s10  ;;  %p2783_p3 = scmp.lt.s32.totalorder %s3808_s16, %s3932_s7 }
 0x28b   : > { %p2784_p6 = scmp.lt.s32.totalorder %s2782_s20, %s2778_s10 }
 0x28c   : > { %p2780_p9 = pnand %p2779_p2, %p3995_p13 }
 0x28d   : > { %p2785_p11 = por %p2784_p6, %p2783_p3 }
 0x28e   : > { %p2781_p1 = pneg %p2780_p9 }
 0x290   : > { %p2786_p12 = pnand %p2785_p11, %p2781_p1 }
 0x292   : > { %2789 = shalt.err (!%p2786_p12)
}
 0x293   : > { %s2864_s22 = smov 128   ;;  %s2865_s24 = smov 8  }
 0x294   : > { %2423 = dma.vmem_to_hbm [thread:$0]  (%p3995_p13), %s3810_s25, 4096, %s3808_s16, %s1910_s13, %s2864_s22, %s2864_s22, %s2865_s24  }
 0x295   : > { %s3839_s19 = scalar_lea.vmem [#allocation6], %s3012_s21  ;;  %s3996_s25 = sshll.u32 %s2933_s9, 12 }
 0x296   : > { %s1944_s21 = sshll.u32 %s3839_s19, 4  ;;  %s3878_s26 = scalar_lea.hbm %s3933_s8, %s3996_s25  ;;  %s3880_s21 = int_to_ptr.vmem [resolvable:$true] %s1944_s21 }
 0x297   : > { %s1915_s10 = scalar_lea.sflag [#allocation7], %s3009_s14  ;;  %s2790_s12 = scalar_lea.vmem %s3880_s21, 4096 }
 0x298   : > { %p2791_p4 = scmp.ne.s32.totalorder %s3880_s21, %s2790_s12  ;;  %s2866_s23 = smov [#allocation6]  }
 0x299   : > { %s2794_s9 = sshll.u32 %s2866_s23, 4  ;;  %s2795_s9 = int_to_ptr.vmem [resolvable:$false] %s2794_s9 }
 0x29a   : > { %p2792_p5 = pnand %p2791_p4, %p3995_p13  ;;  %s2796_s20 = scalar_lea.vmem %s2795_s9, 8192 }
 0x29b   : > { %p2797_p8 = scmp.lt.s32.totalorder %s3880_s21, %s2795_s9  ;;  %p2798_p10 = scmp.lt.s32.totalorder %s2796_s20, %s2790_s12 }
 0x29c   : > { %p2793_p7 = pneg %p2792_p5 }
 0x29d   : > { %p2799_p0 = por %p2798_p10, %p2797_p8 }
 0x29f   : > { %p2800_p2 = pnand %p2799_p0, %p2793_p7 }
 0x30e   : > { %v2375_v38 = vpop.f32.mrf.mxu1 }
 0x30f   : > { %1879 = vst [vmem:[%s3839_s19 + $0x10] sm:$0xff] %v2375_v38 }
 0x310   : > { %v1750_v44 = vpop.f32.mrf.mxu1 }
 0x311   : > { %1877 = vst [vmem:[%s3839_s19] sm:$0xff] %v1750_v44 }
 0x312   : > { %v2376_v24 = vpop.f32.mrf.mxu1 }
 0x313   : > { %1880 = vst [vmem:[%s3839_s19 + $0x18] sm:$0xff] %v2376_v24 }
 0x314   : > { %v1753_v1 = vpop.f32.mrf.mxu1 }
 0x315   : > { %1878 = vst [vmem:[%s3839_s19 + $0x8] sm:$0xff] %v1753_v1 }
 0x317   : > { %v2379_v32 = vpop.f32.mrf.mxu1 }
 0x318   : > { %1883 = vst [vmem:[%s3839_s19 + $0x30] sm:$0xff] %v2379_v32 }
 0x319   : > { %v1766_v0 = vpop.f32.mrf.mxu1 }
 0x31a   : > { %1881 = vst [vmem:[%s3839_s19 + $0x20] sm:$0xff] %v1766_v0 }
 0x31b   : > { %v2380_v20 = vpop.f32.mrf.mxu1 }
 0x31c   : > { %1884 = vst [vmem:[%s3839_s19 + $0x38] sm:$0xff] %v2380_v20 }
 0x31d   : > { %v1769_v51 = vpop.f32.mrf.mxu1 }
 0x31e   : > { %1882 = vst [vmem:[%s3839_s19 + $0x28] sm:$0xff] %v1769_v51 }
 0x31f   : > { %v2383_v57 = vpop.f32.mrf.mxu1 }
 0x320   : > { %1887 = vst [vmem:[%s3839_s19 + $0x50] sm:$0xff] %v2383_v57 }
 0x321   : > { %v1782_v37 = vpop.f32.mrf.mxu1 }
 0x322   : > { %1885 = vst [vmem:[%s3839_s19 + $0x40] sm:$0xff] %v1782_v37 }
 0x323   : > { %v2384_v14 = vpop.f32.mrf.mxu1 }
 0x324   : > { %1888 = vst [vmem:[%s3839_s19 + $0x58] sm:$0xff] %v2384_v14 }
 0x325   : > { %v1785_v16 = vpop.f32.mrf.mxu1 }
 0x326   : > { %1886 = vst [vmem:[%s3839_s19 + $0x48] sm:$0xff] %v1785_v16 }
 0x327   : > { %v2387_v62 = vpop.f32.mrf.mxu1 }
 0x328   : > { %1891 = vst [vmem:[%s3839_s19 + $0x70] sm:$0xff] %v2387_v62 }
 0x329   : > { %v1798_v6 = vpop.f32.mrf.mxu1 }
 0x32a   : > { %1889 = vst [vmem:[%s3839_s19 + $0x60] sm:$0xff] %v1798_v6 }
 0x32b   : > { %v2388_v52 = vpop.f32.mrf.mxu1 }
 0x32c   : > { %1892 = vst [vmem:[%s3839_s19 + $0x78] sm:$0xff] %v2388_v52 }
 0x32d   : > { %v1801_v63 = vpop.f32.mrf.mxu1 }
 0x32e   : > { %1890 = vst [vmem:[%s3839_s19 + $0x68] sm:$0xff] %v1801_v63 }
 0x32f   : > { %v2391_v39 = vpop.f32.mrf.mxu1 }
 0x330   : > { %1895 = vst [vmem:[%s3839_s19 + $0x90] sm:$0xff] %v2391_v39 }
 0x331   : > { %v1814_v15 = vpop.f32.mrf.mxu1 }
 0x332   : > { %1893 = vst [vmem:[%s3839_s19 + $0x80] sm:$0xff] %v1814_v15 }
 0x333   : > { %v2392_v49 = vpop.f32.mrf.mxu1 }
 0x334   : > { %1896 = vst [vmem:[%s3839_s19 + $0x98] sm:$0xff] %v2392_v49 }
 0x335   : > { %v1817_v31 = vpop.f32.mrf.mxu1 }
 0x336   : > { %1894 = vst [vmem:[%s3839_s19 + $0x88] sm:$0xff] %v1817_v31 }
 0x337   : > { %v2395_v8 = vpop.f32.mrf.mxu1 }
 0x338   : > { %1899 = vst [vmem:[%s3839_s19 + $0xb0] sm:$0xff] %v2395_v8 }
 0x339   : > { %v1830_v27 = vpop.f32.mrf.mxu1 }
 0x33a   : > { %1897 = vst [vmem:[%s3839_s19 + $0xa0] sm:$0xff] %v1830_v27 }
 0x33b   : > { %v2396_v54 = vpop.f32.mrf.mxu1 }
 0x33c   : > { %1900 = vst [vmem:[%s3839_s19 + $0xb8] sm:$0xff] %v2396_v54 }
 0x33d   : > { %v1833_v42 = vpop.f32.mrf.mxu1 }
 0x33e   : > { %1898 = vst [vmem:[%s3839_s19 + $0xa8] sm:$0xff] %v1833_v42 }
 0x33f   : > { %v2399_v35 = vpop.f32.mrf.mxu1 }
 0x340   : > { %1903 = vst [vmem:[%s3839_s19 + $0xd0] sm:$0xff] %v2399_v35 }
 0x341   : > { %v1846_v22 = vpop.f32.mrf.mxu1 }
 0x342   : > { %1901 = vst [vmem:[%s3839_s19 + $0xc0] sm:$0xff] %v1846_v22 }
 0x343   : > { %v2400_v41 = vpop.f32.mrf.mxu1 }
 0x344   : > { %1904 = vst [vmem:[%s3839_s19 + $0xd8] sm:$0xff] %v2400_v41 }
 0x345   : > { %v1849_v43 = vpop.f32.mrf.mxu1 }
 0x346   : > { %1902 = vst [vmem:[%s3839_s19 + $0xc8] sm:$0xff] %v1849_v43 }
 0x347   : > { %v2403_v40 = vpop.f32.mrf.mxu1 }
 0x348   : > { %1907 = vst [vmem:[%s3839_s19 + $0xf0] sm:$0xff] %v2403_v40 }
 0x349   : > { %v1862_v55 = vpop.f32.mrf.mxu1 }
 0x34a   : > { %1905 = vst [vmem:[%s3839_s19 + $0xe0] sm:$0xff] %v1862_v55 }
 0x34b   : > { %v2404_v61 = vpop.f32.mrf.mxu1 }
 0x34c   : > { %1908 = vst [vmem:[%s3839_s19 + $0xf8] sm:$0xff] %v2404_v61 }
 0x34d   : > { %v1865_v4 = vpop.f32.mrf.mxu1 }
 0x34e   : > { %1906 = vst [vmem:[%s3839_s19 + $0xe8] sm:$0xff] %v1865_v4 }
 0x34f   : > { %2803 = shalt.err (!%p2800_p2)
}
 0x350   : > { %s2804_s15 = scalar_lea.hbm %s3878_s26, 4096  ;;  %s2808_s25 = scalar_lea.hbm %s3933_s8, 8192 }
 0x351   : > { %p2805_p9 = scmp.ne.s32.totalorder %s3878_s26, %s2804_s15  ;;  %p2809_p6 = scmp.lt.s32.totalorder %s3878_s26, %s3933_s8 }
 0x352   : > { %p2810_p11 = scmp.lt.s32.totalorder %s2808_s25, %s2804_s15 }
 0x353   : > { %p2806_p1 = pnand %p2805_p9, %p3995_p13 }
 0x354   : > { %p2811_p12 = por %p2810_p11, %p2809_p6 }
 0x355   : > { %p2807_p3 = pneg %p2806_p1 }
 0x357   : > { %p2812_p4 = pnand %p2811_p12, %p2807_p3 }
 0x359   : > { %2815 = shalt.err (!%p2812_p4)
}
 0x35a   : > { %2424 = dma.vmem_to_hbm [thread:$0]  (%p3995_p13), %s3880_s21, 4096, %s3878_s26, %s1915_s10, %s2864_s22, %s2864_s22, %s2865_s24  }
 0x35b PF: > { %s1959_s12 = sand.u32 1, %s2846_s27   ;;  %p3997_p5 = scmp.ne.s32.totalorder %s3958_s18, 0 }
 0x35c   : > { %p3998_p7 = scmp.ge.s32.totalorder %s2858_s30, 2  ;;  %s1960_s23 = scalar_lea.sflag [#allocation4], %s1959_s12 }
 0x35e   : > { %p2432_p8 = pnand %p3998_p7, %p3997_p5 }
 0x360   : > { %p2433_p10 = pneg %p2432_p8 }
 0x362   : > { %2837 = dma.done.wait (%p2433_p10), %s1960_s23, 4096  }
 0x363   : > { %2839 = vsyncadd (%p2433_p10), %s1960_s23, 4294963200  ;;  %s1969_s9 = scalar_lea.sflag [#allocation7], %s1959_s12 }
 0x364   : > { %2841 = dma.done.wait (%p2433_p10), %s1969_s9, 4096  }
 0x365   : > { %2843 = vsyncadd (%p2433_p10), %s1969_s9, 4294963200  ;;  %s3999_s17 = sld [smem:[#allocation11_spill]]  ;;  %p25_p13 = scmp.ge.s32.totalorder %s2937_s11, 4  }
 0x366   : > { %s4000_s27 = smov %s2850_s28  ;;  %s4001_s28 = smov %s2854_s29 }
 0x367   : > { %s4003_s30 = smov %s2937_s11  ;;  %27 = sbr.rel (!%p25_p13) target bundleno = 7 (0x7), region = 113 }
 0x36b   : > { %s4002_s29 = smov %s3999_s17 }
 0x36c   :  { %1974 = vsyncpa [#allocation3], 1 }
 0x36d   :  { %1976 = vsyncpa [#allocation3 + $0x1], 1 }
 0x36e   :  { %1977 = vsyncpa [#allocation4], 1 }
 0x36f   :  { %1979 = vsyncpa [#allocation4 + $0x1], 1 }
 0x370   :  { %1980 = vsyncpa [#allocation7], 1 }
 0x371   :  { %1982 = vsyncpa [#allocation7 + $0x1], 1 }

</bundles_post_ra>
